<compile_context>
chip_gen: v7x
topology: tpu7x:2x2x1
jax: 0.10.0
libtpu: 0.0.40
codegen_flags: <defaults>
</compile_context>

<pallas_src>
import numpy as np
import jax
import jax.numpy as jnp
from jax.experimental import pallas as pl
from jax.experimental.pallas import tpu as pltpu

# ---- model hyper-parameters (small, consistent with the module) ----
B      = 2       # batch
S      = 8       # sequence length == in_feats
E      = 32      # n_embd
H      = 4       # n_head
DH     = E // H  # head dim = 8
DFF    = 64      # dim_feedforward
L      = 2       # n_layer
VOCAB  = 50      # vocab_size
VP     = 64      # padded vocab width for the one-hot gather matmul
R      = B * S   # fused batch*seq rows = 16
LN_EPS = 1e-5

# ---- f32 parameter-slab row layout (all static offsets 8-row aligned) ----
ROW_EMB  = 0                  # [0, 64)   embedding table (first VOCAB rows used)
ROW_PE   = 64                 # [64, 80)  positional encoding tiled over batch
ROW_WOUT = 80                 # [80, 96)  output weight reshaped (S,E), tiled over batch
ROW_MASK = 96                 # [96, 112) block-diagonal additive attn mask, cols [0,R)
ROW_LN1  = 112                # ln1 weight of layer l at row 112 + 8*l
ROW_LN2  = 128                # ln2 weight of layer l at row 128 + 8*l
ROW_SEL  = 144                # [144, 146) batch-fold 0/1 selector, cols [0,R)
F32_ROWS = 152

# ---- bf16 weight-slab row layout (per-layer block of WB_ROWS rows) ----
RW_QKV  = 0                   # rows [0, 32)   cols [0, 96) : in_proj_weight.T
RW_WO   = E                   # rows [32, 64)  cols [0, 32) : out_proj.weight.T
RW_FF1  = 2 * E               # rows [64, 96)  cols [0, 64) : linear1.weight.T
RW_FF2  = 3 * E               # rows [96, 160) cols [0, 32) : linear2.weight.T
WB_ROWS = 3 * E + DFF         # 160 (multiple of bf16 sublane tile 16)
WB_COLS = 3 * E               # 96


# ----------------------- in-kernel helpers -----------------------
def _erf(x):
    # Abramowitz & Stegun 7.1.26 polynomial (exp + EUP reciprocal only).
    p = 0.3275911
    a1, a2, a3, a4, a5 = 0.254829592, -0.284496736, 1.421413741, -1.453152027, 1.061405429
    sgn = jnp.where(x >= 0.0, 1.0, -1.0)
    ax = jnp.abs(x)
    t = pl.reciprocal(1.0 + p * ax, approx=True)          # EUP slot
    poly = ((((a5 * t + a4) * t + a3) * t + a2) * t + a1) * t
    return sgn * (1.0 - poly * jnp.exp(-ax * ax))


def _gelu_exact(x):
    return 0.5 * x * (1.0 + _erf(x * 0.7071067811865476))


def _layer_norm(x, w_row):
    mu = jnp.mean(x, axis=-1, keepdims=True)
    var = jnp.mean((x - mu) ** 2, axis=-1, keepdims=True)
    return (x - mu) * jax.lax.rsqrt(var + LN_EPS) * w_row


def _mm(a_f32, w_bf16):
    # autocast emulation: bf16 operands on the MXU, f32 accumulation.
    return jnp.dot(a_f32.astype(jnp.bfloat16), w_bf16,
                   preferred_element_type=jnp.float32)


# ----------------------------- kernel -----------------------------
def transformer_kernel(ids_ref, f32_ref, wbf_ref, out_ref, ctx_ref):
    # ids_ref : (R, 1)               i32  VMEM  flattened token ids
    # f32_ref : (F32_ROWS, E)        f32  VMEM  packed f32 params (layout above)
    # wbf_ref : (L*WB_ROWS, WB_COLS) bf16 VMEM  packed matmul weights (transposed)
    # out_ref : (B, 1)               f32  sigmoid(logit)
    # ctx_ref : (R, E)               f32  VMEM scratch for per-head contexts

    # ---- embedding gather as a one-hot matmul on the MXU + positional enc ----
    ids = ids_ref[...]                                               # (R, 1) i32
    vocab_iota = jax.lax.broadcasted_iota(jnp.int32, (R, VP), 1)
    onehot = (vocab_iota == ids).astype(jnp.float32)                 # (R, VP) 0/1
    emb = f32_ref[ROW_EMB:ROW_EMB + VP, :]                           # (VP, E)
    x = jnp.dot(onehot, emb, preferred_element_type=jnp.float32)     # (R, E) f32
    x = x + f32_ref[ROW_PE:ROW_PE + R, :]

    # precomputed constants (loaded once, hoisted out of the layer loop)
    attn_mask = f32_ref[ROW_MASK:ROW_MASK + R, 0:R]                  # (R, R) 0 / -1e30

    scale = float(1.0 / np.sqrt(DH))
    for l in range(L):                                   # static unroll, L=2
        base = l * WB_ROWS
        wqkv = wbf_ref[base + RW_QKV:base + RW_QKV + E, 0:3 * E]     # (E, 3E)
        wo   = wbf_ref[base + RW_WO:base + RW_WO + E, 0:E]           # (E, E)
        wff1 = wbf_ref[base + RW_FF1:base + RW_FF1 + E, 0:DFF]       # (E, DFF)
        wff2 = wbf_ref[base + RW_FF2:base + RW_FF2 + DFF, 0:E]       # (DFF, E)

        # ---------------- self-attention block ----------------
        qkv = _mm(x, wqkv)                               # (R, 3E) f32
        qkv_bf = qkv.astype(jnp.bfloat16)                # single cast per layer
        for h in range(H):                               # static unroll, H=4
            q = qkv_bf[:, h * DH:(h + 1) * DH] * scale            # (R, DH) bf16
            k = qkv_bf[:, E + h * DH:E + (h + 1) * DH]            # (R, DH)
            v = qkv_bf[:, 2 * E + h * DH:2 * E + (h + 1) * DH]    # (R, DH)
            # (R, DH) @ (DH, R) NT matmul; cross-batch blocks masked additively.
            sc = jax.lax.dot_general(q, k, (((1,), (1,)), ((), ())),
                                     preferred_element_type=jnp.float32)
            sc = sc + attn_mask
            sc = sc - jnp.max(sc, axis=-1, keepdims=True)
            p = jnp.exp(sc)
            p = p / jnp.sum(p, axis=-1, keepdims=True)             # exact divide
            ctx_ref[:, h * DH:(h + 1) * DH] = jnp.dot(
                p.astype(jnp.bfloat16), v, preferred_element_type=jnp.float32)
        attn = _mm(ctx_ref[...], wo)                     # full-width out-proj
        x = _layer_norm(x + attn,
                        f32_ref[ROW_LN1 + 8 * l:ROW_LN1 + 8 * l + 1, :])  # post-LN

        # ---------------- feed-forward block -------------------
        h1 = _gelu_exact(_mm(x, wff1))                   # (R, DFF)
        h2 = _mm(h1, wff2)                               # (R, E)
        x = _layer_norm(x + h2,
                        f32_ref[ROW_LN2 + 8 * l:ROW_LN2 + 8 * l + 1, :])  # post-LN

    # ---- flatten(S*E) @ W_out.T + sigmoid (f32, outside autocast) ----
    prod = x * f32_ref[ROW_WOUT:ROW_WOUT + R, :]                   # (R, E)
    sel = f32_ref[ROW_SEL:ROW_SEL + B, 0:R]                        # (B, R) 0/1
    batched = jnp.dot(sel, prod, preferred_element_type=jnp.float32)  # (B, E)
    logits = jnp.sum(batched, axis=-1, keepdims=True)              # (B, 1)
    out_ref[...] = 1.0 / (1.0 + jnp.exp(-logits))                  # single store


# ----------------------------- wrapper -----------------------------
def transformer_forward(tokens, params):
    ids = tokens.reshape(R, 1).astype(jnp.int32)
    # Grid-less single step: everything (<100 KiB) stays VMEM-resident on
    # v5e/v6e/v7x; only 3 entry DMAs (ids + 2 packed parameter slabs).
    return pl.pallas_call(
        transformer_kernel,
        out_shape=jax.ShapeDtypeStruct((B, 1), jnp.float32),
        in_specs=[pl.BlockSpec(memory_space=pltpu.MemorySpace.VMEM)] * 3,
        out_specs=pl.BlockSpec(memory_space=pltpu.MemorySpace.VMEM),
        scratch_shapes=[pltpu.VMEM((R, E), jnp.float32)],
    )(ids, params["f32_slab"], params["bf16_slab"])


# ------------------------- parameter init --------------------------
def init_params(key):
    ks = jax.random.split(key, 6)

    def normal(k, shape, std=0.02):
        return np.asarray(jax.random.normal(k, shape, jnp.float32)) * std

    emb  = normal(ks[0], (VOCAB, E))
    wqkv = normal(ks[1], (L, 3 * E, E))      # nn.MultiheadAttention.in_proj_weight
    wo   = normal(ks[2], (L, E, E))          # out_proj.weight
    wff1 = normal(ks[3], (L, DFF, E))        # linear1.weight
    wff2 = normal(ks[4], (L, E, DFF))        # linear2.weight
    wout = normal(ks[5], (1, S * E))         # output_layer.weight
    ln1  = np.ones((L, E), np.float32)       # LayerNorm weight (bias=False)
    ln2  = np.ones((L, E), np.float32)

    # sinusoidal positional encoding (first S rows), pre-tiled over batch
    pos = np.arange(S, dtype=np.float32)[:, None]
    div = np.exp(np.arange(0, E, 2, dtype=np.float32) * (-np.log(10000.0) / E))
    pe = np.zeros((S, E), np.float32)
    pe[:, 0::2] = np.sin(pos * div)
    pe[:, 1::2] = np.cos(pos * div)
    pe_r = np.tile(pe, (B, 1))                                   # (R, E)

    # block-diagonal additive attention mask + batch-fold selector (constants)
    rb = np.arange(R) // S                                       # row -> batch id
    mask = np.where(rb[:, None] == rb[None, :], 0.0, -1e30).astype(np.float32)  # (R, R)
    sel = (np.arange(B)[:, None] == rb[None, :]).astype(np.float32)             # (B, R)

    # ---- packed f32 slab ----
    f32_slab = np.zeros((F32_ROWS, E), np.float32)
    f32_slab[ROW_EMB:ROW_EMB + VOCAB, :] = emb
    f32_slab[ROW_PE:ROW_PE + R, :] = pe_r
    f32_slab[ROW_WOUT:ROW_WOUT + R, :] = np.tile(wout.reshape(S, E), (B, 1))
    f32_slab[ROW_MASK:ROW_MASK + R, 0:R] = mask
    for l in range(L):
        f32_slab[ROW_LN1 + 8 * l, :] = ln1[l]
        f32_slab[ROW_LN2 + 8 * l, :] = ln2[l]
    f32_slab[ROW_SEL:ROW_SEL + B, 0:R] = sel

    # ---- packed bf16 weight slab (all matmul weights, pre-transposed) ----
    wb = np.zeros((L * WB_ROWS, WB_COLS), np.float32)
    for l in range(L):
        base = l * WB_ROWS
        wb[base + RW_QKV:base + RW_QKV + E, 0:3 * E] = wqkv[l].T   # (E, 3E)
        wb[base + RW_WO:base + RW_WO + E, 0:E]       = wo[l].T     # (E, E)
        wb[base + RW_FF1:base + RW_FF1 + E, 0:DFF]   = wff1[l].T   # (E, DFF)
        wb[base + RW_FF2:base + RW_FF2 + DFF, 0:E]   = wff2[l].T   # (DFF, E)

    return {
        "f32_slab": jnp.asarray(f32_slab),                        # f32
        "bf16_slab": jnp.asarray(wb).astype(jnp.bfloat16),        # bf16
    }


if __name__ == "__main__":
    key = jax.random.PRNGKey(0)
    pkey, tkey = jax.random.split(key)
    params = init_params(pkey)
    tokens = jax.random.randint(tkey, (B, S), 0, VOCAB, dtype=jnp.int32)

    out = transformer_forward(tokens, params)
    out = jax.block_until_ready(out)
    assert out.shape == (B, 1) and out.dtype == jnp.float32
    assert bool(jnp.all(jnp.isfinite(out)))
    assert bool(jnp.all((out > 0.0) & (out < 1.0)))
    print("KERNEL_OK")
</pallas_src>

<mosaic_0001>
module attributes {stable_mosaic.version = 11 : i64} {
  func.func @transformer_kernel(%arg0: memref<16x1xi32, #tpu.memory_space<vmem>>, %arg1: memref<152x32xf32, #tpu.memory_space<vmem>>, %arg2: memref<320x96xbf16, #tpu.memory_space<vmem>>, %arg3: memref<2x1xf32, #tpu.memory_space<vmem>>, %arg4: memref<16x32xf32, #tpu.memory_space<vmem>>) attributes {dimension_semantics = [], scalar_prefetch = 0 : i64, scratch_operands = 1 : i64, tpu.core_type = #tpu.core_type<tc>} {
    %c0 = arith.constant 0 : index
    %c0_0 = arith.constant 0 : index
    %0 = vector.load %arg0[%c0, %c0_0] : memref<16x1xi32, #tpu.memory_space<vmem>>, vector<16x1xi32>
    %1 = tpu.iota {dimensions = array<i32: 1>} : vector<16x64xi32>
    %2 = vector.broadcast %0 : vector<16x1xi32> to vector<16x64xi32>
    %3 = arith.cmpi eq, %1, %2 : vector<16x64xi32>
    %4 = arith.extui %3 : vector<16x64xi1> to vector<16x64xi32>
    %5 = arith.sitofp %4 : vector<16x64xi32> to vector<16x64xf32>
    %c0_1 = arith.constant 0 : index
    %c0_2 = arith.constant 0 : index
    %6 = vector.load %arg1[%c0_1, %c0_2] : memref<152x32xf32, #tpu.memory_space<vmem>>, vector<64x32xf32>
    %cst = arith.constant dense<0.000000e+00> : vector<16x32xf32>
    %7 = tpu.matmul %5, %6, %cst {dimension_numbers = #tpu.dot_dimension_numbers<[1], [0], [0], [1], [0, 0, 1, 1], [], []>} : vector<16x64xf32>, vector<64x32xf32>, vector<16x32xf32> -> vector<16x32xf32>
    %c64 = arith.constant 64 : index
    %c0_3 = arith.constant 0 : index
    %8 = vector.load %arg1[%c64, %c0_3] : memref<152x32xf32, #tpu.memory_space<vmem>>, vector<16x32xf32>
    %9 = arith.addf %7, %8 : vector<16x32xf32>
    %c96 = arith.constant 96 : index
    %c0_4 = arith.constant 0 : index
    %10 = vector.load %arg1[%c96, %c0_4] : memref<152x32xf32, #tpu.memory_space<vmem>>, vector<16x16xf32>
    %c0_5 = arith.constant 0 : index
    %c0_6 = arith.constant 0 : index
    %11 = vector.load %arg2[%c0_5, %c0_6] : memref<320x96xbf16, #tpu.memory_space<vmem>>, vector<32x96xbf16>
    %c32 = arith.constant 32 : index
    %c0_7 = arith.constant 0 : index
    %12 = vector.load %arg2[%c32, %c0_7] : memref<320x96xbf16, #tpu.memory_space<vmem>>, vector<32x32xbf16>
    %c64_8 = arith.constant 64 : index
    %c0_9 = arith.constant 0 : index
    %13 = vector.load %arg2[%c64_8, %c0_9] : memref<320x96xbf16, #tpu.memory_space<vmem>>, vector<32x64xbf16>
    %c96_10 = arith.constant 96 : index
    %c0_11 = arith.constant 0 : index
    %14 = vector.load %arg2[%c96_10, %c0_11] : memref<320x96xbf16, #tpu.memory_space<vmem>>, vector<64x32xbf16>
    %15 = arith.truncf %9 : vector<16x32xf32> to vector<16x32xbf16>
    %cst_12 = arith.constant dense<0.000000e+00> : vector<16x96xf32>
    %16 = tpu.matmul %15, %11, %cst_12 {dimension_numbers = #tpu.dot_dimension_numbers<[1], [0], [0], [1], [0, 0, 1, 1], [], []>} : vector<16x32xbf16>, vector<32x96xbf16>, vector<16x96xf32> -> vector<16x96xf32>
    %17 = arith.truncf %16 : vector<16x96xf32> to vector<16x96xbf16>
    %18 = vector.extract_strided_slice %17 {offsets = [0, 0], sizes = [16, 8], strides = [1, 1]} : vector<16x96xbf16> to vector<16x8xbf16>
    %cst_13 = arith.constant 3.535160e-01 : bf16
    %19 = vector.broadcast %cst_13 : bf16 to vector<16x8xbf16>
    %20 = arith.mulf %18, %19 : vector<16x8xbf16>
    %21 = vector.extract_strided_slice %17 {offsets = [0, 32], sizes = [16, 8], strides = [1, 1]} : vector<16x96xbf16> to vector<16x8xbf16>
    %22 = vector.extract_strided_slice %17 {offsets = [0, 64], sizes = [16, 8], strides = [1, 1]} : vector<16x96xbf16> to vector<16x8xbf16>
    %cst_14 = arith.constant dense<0.000000e+00> : vector<16x16xf32>
    %23 = tpu.matmul %20, %21, %cst_14 {dimension_numbers = #tpu.dot_dimension_numbers<[1], [1], [0], [0], [0, 0, 1, 0], [], []>} : vector<16x8xbf16>, vector<16x8xbf16>, vector<16x16xf32> -> vector<16x16xf32>
    %24 = arith.addf %23, %10 : vector<16x16xf32>
    %cst_15 = arith.constant dense<0xFF800000> : vector<16xf32>
    %25 = vector.multi_reduction <maximumf>, %24, %cst_15 [1] : vector<16x16xf32> to vector<16xf32>
    %26 = vector.shape_cast %25 : vector<16xf32> to vector<16x1xf32>
    %27 = vector.broadcast %26 : vector<16x1xf32> to vector<16x16xf32>
    %28 = arith.subf %24, %27 : vector<16x16xf32>
    %29 = math.exp %28 : vector<16x16xf32>
    %cst_16 = arith.constant dense<0.000000e+00> : vector<16xf32>
    %30 = vector.multi_reduction <add>, %29, %cst_16 [1] : vector<16x16xf32> to vector<16xf32>
    %31 = vector.shape_cast %30 : vector<16xf32> to vector<16x1xf32>
    %32 = vector.broadcast %31 : vector<16x1xf32> to vector<16x16xf32>
    %33 = arith.divf %29, %32 : vector<16x16xf32>
    %34 = arith.truncf %33 : vector<16x16xf32> to vector<16x16xbf16>
    %cst_17 = arith.constant dense<0.000000e+00> : vector<16x8xf32>
    %35 = tpu.matmul %34, %22, %cst_17 {dimension_numbers = #tpu.dot_dimension_numbers<[1], [0], [0], [1], [0, 0, 1, 1], [], []>} : vector<16x16xbf16>, vector<16x8xbf16>, vector<16x8xf32> -> vector<16x8xf32>
    %c0_18 = arith.constant 0 : index
    %c0_19 = arith.constant 0 : index
    %36 = vector.load %arg4[%c0_18, %c0_19] : memref<16x32xf32, #tpu.memory_space<vmem>>, vector<16x8xf32>
    tpu.vector_store %arg4[%c0_18, %c0_19], %35 {strides = array<i32>} : memref<16x32xf32, #tpu.memory_space<vmem>>, vector<16x8xf32>,
    %37 = vector.extract_strided_slice %17 {offsets = [0, 8], sizes = [16, 8], strides = [1, 1]} : vector<16x96xbf16> to vector<16x8xbf16>
    %cst_20 = arith.constant 3.535160e-01 : bf16
    %38 = vector.broadcast %cst_20 : bf16 to vector<16x8xbf16>
    %39 = arith.mulf %37, %38 : vector<16x8xbf16>
    %40 = vector.extract_strided_slice %17 {offsets = [0, 40], sizes = [16, 8], strides = [1, 1]} : vector<16x96xbf16> to vector<16x8xbf16>
    %41 = vector.extract_strided_slice %17 {offsets = [0, 72], sizes = [16, 8], strides = [1, 1]} : vector<16x96xbf16> to vector<16x8xbf16>
    %cst_21 = arith.constant dense<0.000000e+00> : vector<16x16xf32>
    %42 = tpu.matmul %39, %40, %cst_21 {dimension_numbers = #tpu.dot_dimension_numbers<[1], [1], [0], [0], [0, 0, 1, 0], [], []>} : vector<16x8xbf16>, vector<16x8xbf16>, vector<16x16xf32> -> vector<16x16xf32>
    %43 = arith.addf %42, %10 : vector<16x16xf32>
    %cst_22 = arith.constant dense<0xFF800000> : vector<16xf32>
    %44 = vector.multi_reduction <maximumf>, %43, %cst_22 [1] : vector<16x16xf32> to vector<16xf32>
    %45 = vector.shape_cast %44 : vector<16xf32> to vector<16x1xf32>
    %46 = vector.broadcast %45 : vector<16x1xf32> to vector<16x16xf32>
    %47 = arith.subf %43, %46 : vector<16x16xf32>
    %48 = math.exp %47 : vector<16x16xf32>
    %cst_23 = arith.constant dense<0.000000e+00> : vector<16xf32>
    %49 = vector.multi_reduction <add>, %48, %cst_23 [1] : vector<16x16xf32> to vector<16xf32>
    %50 = vector.shape_cast %49 : vector<16xf32> to vector<16x1xf32>
    %51 = vector.broadcast %50 : vector<16x1xf32> to vector<16x16xf32>
    %52 = arith.divf %48, %51 : vector<16x16xf32>
    %53 = arith.truncf %52 : vector<16x16xf32> to vector<16x16xbf16>
    %cst_24 = arith.constant dense<0.000000e+00> : vector<16x8xf32>
    %54 = tpu.matmul %53, %41, %cst_24 {dimension_numbers = #tpu.dot_dimension_numbers<[1], [0], [0], [1], [0, 0, 1, 1], [], []>} : vector<16x16xbf16>, vector<16x8xbf16>, vector<16x8xf32> -> vector<16x8xf32>
    %c0_25 = arith.constant 0 : index
    %c8 = arith.constant 8 : index
    %55 = vector.load %arg4[%c0_25, %c8] : memref<16x32xf32, #tpu.memory_space<vmem>>, vector<16x8xf32>
    tpu.vector_store %arg4[%c0_25, %c8], %54 {strides = array<i32>} : memref<16x32xf32, #tpu.memory_space<vmem>>, vector<16x8xf32>,
    %56 = vector.extract_strided_slice %17 {offsets = [0, 16], sizes = [16, 8], strides = [1, 1]} : vector<16x96xbf16> to vector<16x8xbf16>
    %cst_26 = arith.constant 3.535160e-01 : bf16
    %57 = vector.broadcast %cst_26 : bf16 to vector<16x8xbf16>
    %58 = arith.mulf %56, %57 : vector<16x8xbf16>
    %59 = vector.extract_strided_slice %17 {offsets = [0, 48], sizes = [16, 8], strides = [1, 1]} : vector<16x96xbf16> to vector<16x8xbf16>
    %60 = vector.extract_strided_slice %17 {offsets = [0, 80], sizes = [16, 8], strides = [1, 1]} : vector<16x96xbf16> to vector<16x8xbf16>
    %cst_27 = arith.constant dense<0.000000e+00> : vector<16x16xf32>
    %61 = tpu.matmul %58, %59, %cst_27 {dimension_numbers = #tpu.dot_dimension_numbers<[1], [1], [0], [0], [0, 0, 1, 0], [], []>} : vector<16x8xbf16>, vector<16x8xbf16>, vector<16x16xf32> -> vector<16x16xf32>
    %62 = arith.addf %61, %10 : vector<16x16xf32>
    %cst_28 = arith.constant dense<0xFF800000> : vector<16xf32>
    %63 = vector.multi_reduction <maximumf>, %62, %cst_28 [1] : vector<16x16xf32> to vector<16xf32>
    %64 = vector.shape_cast %63 : vector<16xf32> to vector<16x1xf32>
    %65 = vector.broadcast %64 : vector<16x1xf32> to vector<16x16xf32>
    %66 = arith.subf %62, %65 : vector<16x16xf32>
    %67 = math.exp %66 : vector<16x16xf32>
    %cst_29 = arith.constant dense<0.000000e+00> : vector<16xf32>
    %68 = vector.multi_reduction <add>, %67, %cst_29 [1] : vector<16x16xf32> to vector<16xf32>
    %69 = vector.shape_cast %68 : vector<16xf32> to vector<16x1xf32>
    %70 = vector.broadcast %69 : vector<16x1xf32> to vector<16x16xf32>
    %71 = arith.divf %67, %70 : vector<16x16xf32>
    %72 = arith.truncf %71 : vector<16x16xf32> to vector<16x16xbf16>
    %cst_30 = arith.constant dense<0.000000e+00> : vector<16x8xf32>
    %73 = tpu.matmul %72, %60, %cst_30 {dimension_numbers = #tpu.dot_dimension_numbers<[1], [0], [0], [1], [0, 0, 1, 1], [], []>} : vector<16x16xbf16>, vector<16x8xbf16>, vector<16x8xf32> -> vector<16x8xf32>
    %c0_31 = arith.constant 0 : index
    %c16 = arith.constant 16 : index
    %74 = vector.load %arg4[%c0_31, %c16] : memref<16x32xf32, #tpu.memory_space<vmem>>, vector<16x8xf32>
    tpu.vector_store %arg4[%c0_31, %c16], %73 {strides = array<i32>} : memref<16x32xf32, #tpu.memory_space<vmem>>, vector<16x8xf32>,
    %75 = vector.extract_strided_slice %17 {offsets = [0, 24], sizes = [16, 8], strides = [1, 1]} : vector<16x96xbf16> to vector<16x8xbf16>
    %cst_32 = arith.constant 3.535160e-01 : bf16
    %76 = vector.broadcast %cst_32 : bf16 to vector<16x8xbf16>
    %77 = arith.mulf %75, %76 : vector<16x8xbf16>
    %78 = vector.extract_strided_slice %17 {offsets = [0, 56], sizes = [16, 8], strides = [1, 1]} : vector<16x96xbf16> to vector<16x8xbf16>
    %79 = vector.extract_strided_slice %17 {offsets = [0, 88], sizes = [16, 8], strides = [1, 1]} : vector<16x96xbf16> to vector<16x8xbf16>
    %cst_33 = arith.constant dense<0.000000e+00> : vector<16x16xf32>
    %80 = tpu.matmul %77, %78, %cst_33 {dimension_numbers = #tpu.dot_dimension_numbers<[1], [1], [0], [0], [0, 0, 1, 0], [], []>} : vector<16x8xbf16>, vector<16x8xbf16>, vector<16x16xf32> -> vector<16x16xf32>
    %81 = arith.addf %80, %10 : vector<16x16xf32>
    %cst_34 = arith.constant dense<0xFF800000> : vector<16xf32>
    %82 = vector.multi_reduction <maximumf>, %81, %cst_34 [1] : vector<16x16xf32> to vector<16xf32>
    %83 = vector.shape_cast %82 : vector<16xf32> to vector<16x1xf32>
    %84 = vector.broadcast %83 : vector<16x1xf32> to vector<16x16xf32>
    %85 = arith.subf %81, %84 : vector<16x16xf32>
    %86 = math.exp %85 : vector<16x16xf32>
    %cst_35 = arith.constant dense<0.000000e+00> : vector<16xf32>
    %87 = vector.multi_reduction <add>, %86, %cst_35 [1] : vector<16x16xf32> to vector<16xf32>
    %88 = vector.shape_cast %87 : vector<16xf32> to vector<16x1xf32>
    %89 = vector.broadcast %88 : vector<16x1xf32> to vector<16x16xf32>
    %90 = arith.divf %86, %89 : vector<16x16xf32>
    %91 = arith.truncf %90 : vector<16x16xf32> to vector<16x16xbf16>
    %cst_36 = arith.constant dense<0.000000e+00> : vector<16x8xf32>
    %92 = tpu.matmul %91, %79, %cst_36 {dimension_numbers = #tpu.dot_dimension_numbers<[1], [0], [0], [1], [0, 0, 1, 1], [], []>} : vector<16x16xbf16>, vector<16x8xbf16>, vector<16x8xf32> -> vector<16x8xf32>
    %c0_37 = arith.constant 0 : index
    %c24 = arith.constant 24 : index
    %93 = vector.load %arg4[%c0_37, %c24] : memref<16x32xf32, #tpu.memory_space<vmem>>, vector<16x8xf32>
    tpu.vector_store %arg4[%c0_37, %c24], %92 {strides = array<i32>} : memref<16x32xf32, #tpu.memory_space<vmem>>, vector<16x8xf32>,
    %c0_38 = arith.constant 0 : index
    %c0_39 = arith.constant 0 : index
    %94 = vector.load %arg4[%c0_38, %c0_39] : memref<16x32xf32, #tpu.memory_space<vmem>>, vector<16x32xf32>
    %95 = arith.truncf %94 : vector<16x32xf32> to vector<16x32xbf16>
    %cst_40 = arith.constant dense<0.000000e+00> : vector<16x32xf32>
    %96 = tpu.matmul %95, %12, %cst_40 {dimension_numbers = #tpu.dot_dimension_numbers<[1], [0], [0], [1], [0, 0, 1, 1], [], []>} : vector<16x32xbf16>, vector<32x32xbf16>, vector<16x32xf32> -> vector<16x32xf32>
    %97 = arith.addf %9, %96 : vector<16x32xf32>
    %c112 = arith.constant 112 : index
    %c0_41 = arith.constant 0 : index
    %98 = vector.load %arg1[%c112, %c0_41] : memref<152x32xf32, #tpu.memory_space<vmem>>, vector<1x32xf32>
    %cst_42 = arith.constant dense<0.000000e+00> : vector<16xf32>
    %99 = vector.multi_reduction <add>, %97, %cst_42 [1] : vector<16x32xf32> to vector<16xf32>
    %100 = vector.shape_cast %99 : vector<16xf32> to vector<16x1xf32>
    %cst_43 = arith.constant 3.200000e+01 : f32
    %101 = vector.broadcast %cst_43 : f32 to vector<16x1xf32>
    %102 = arith.divf %100, %101 : vector<16x1xf32>
    %103 = vector.broadcast %102 : vector<16x1xf32> to vector<16x32xf32>
    %104 = arith.subf %97, %103 : vector<16x32xf32>
    %105 = arith.mulf %104, %104 : vector<16x32xf32>
    %cst_44 = arith.constant dense<0.000000e+00> : vector<16xf32>
    %106 = vector.multi_reduction <add>, %105, %cst_44 [1] : vector<16x32xf32> to vector<16xf32>
    %107 = vector.shape_cast %106 : vector<16xf32> to vector<16x1xf32>
    %cst_45 = arith.constant 3.200000e+01 : f32
    %108 = vector.broadcast %cst_45 : f32 to vector<16x1xf32>
    %109 = arith.divf %107, %108 : vector<16x1xf32>
    %110 = vector.broadcast %102 : vector<16x1xf32> to vector<16x32xf32>
    %111 = arith.subf %97, %110 : vector<16x32xf32>
    %cst_46 = arith.constant 9.99999974E-6 : f32
    %112 = vector.broadcast %cst_46 : f32 to vector<16x1xf32>
    %113 = arith.addf %109, %112 : vector<16x1xf32>
    %114 = math.rsqrt %113 : vector<16x1xf32>
    %115 = vector.broadcast %114 : vector<16x1xf32> to vector<16x32xf32>
    %116 = arith.mulf %111, %115 : vector<16x32xf32>
    %117 = vector.broadcast %98 : vector<1x32xf32> to vector<16x32xf32>
    %118 = arith.mulf %116, %117 : vector<16x32xf32>
    %119 = arith.truncf %118 : vector<16x32xf32> to vector<16x32xbf16>
    %cst_47 = arith.constant dense<0.000000e+00> : vector<16x64xf32>
    %120 = tpu.matmul %119, %13, %cst_47 {dimension_numbers = #tpu.dot_dimension_numbers<[1], [0], [0], [1], [0, 0, 1, 1], [], []>} : vector<16x32xbf16>, vector<32x64xbf16>, vector<16x64xf32> -> vector<16x64xf32>
    %cst_48 = arith.constant 5.000000e-01 : f32
    %121 = vector.broadcast %cst_48 : f32 to vector<16x64xf32>
    %122 = arith.mulf %121, %120 : vector<16x64xf32>
    %cst_49 = arith.constant 0.707106769 : f32
    %123 = vector.broadcast %cst_49 : f32 to vector<16x64xf32>
    %124 = arith.mulf %120, %123 : vector<16x64xf32>
    %cst_50 = arith.constant 0.000000e+00 : f32
    %125 = vector.broadcast %cst_50 : f32 to vector<16x64xf32>
    %126 = arith.cmpf oge, %124, %125 : vector<16x64xf32>
    %cst_51 = arith.constant 1.000000e+00 : f32
    %cst_52 = arith.constant -1.000000e+00 : f32
    %127 = vector.broadcast %cst_51 : f32 to vector<16x64xf32>
    %128 = vector.broadcast %cst_52 : f32 to vector<16x64xf32>
    %129 = arith.select %126, %127, %128 : vector<16x64xi1>, vector<16x64xf32>
    %130 = math.absf %124 : vector<16x64xf32>
    %cst_53 = arith.constant 0.327591091 : f32
    %131 = vector.broadcast %cst_53 : f32 to vector<16x64xf32>
    %132 = arith.mulf %131, %130 : vector<16x64xf32>
    %cst_54 = arith.constant 1.000000e+00 : f32
    %133 = vector.broadcast %cst_54 : f32 to vector<16x64xf32>
    %134 = arith.addf %133, %132 : vector<16x64xf32>
    %135 = tpu.reciprocal %134 {approx = true} : vector<16x64xf32> -> vector<16x64xf32>
    %cst_55 = arith.constant 1.06140542 : f32
    %136 = vector.broadcast %cst_55 : f32 to vector<16x64xf32>
    %137 = arith.mulf %136, %135 : vector<16x64xf32>
    %cst_56 = arith.constant -1.45315206 : f32
    %138 = vector.broadcast %cst_56 : f32 to vector<16x64xf32>
    %139 = arith.addf %137, %138 : vector<16x64xf32>
    %140 = arith.mulf %139, %135 : vector<16x64xf32>
    %cst_57 = arith.constant 1.42141378 : f32
    %141 = vector.broadcast %cst_57 : f32 to vector<16x64xf32>
    %142 = arith.addf %140, %141 : vector<16x64xf32>
    %143 = arith.mulf %142, %135 : vector<16x64xf32>
    %cst_58 = arith.constant -0.284496725 : f32
    %144 = vector.broadcast %cst_58 : f32 to vector<16x64xf32>
    %145 = arith.addf %143, %144 : vector<16x64xf32>
    %146 = arith.mulf %145, %135 : vector<16x64xf32>
    %cst_59 = arith.constant 0.254829586 : f32
    %147 = vector.broadcast %cst_59 : f32 to vector<16x64xf32>
    %148 = arith.addf %146, %147 : vector<16x64xf32>
    %149 = arith.mulf %148, %135 : vector<16x64xf32>
    %cst_60 = arith.constant 0.000000e+00 : f32
    %150 = vector.broadcast %cst_60 : f32 to vector<16x64xf32>
    %151 = arith.subf %150, %130 : vector<16x64xf32>
    %152 = arith.mulf %151, %130 : vector<16x64xf32>
    %153 = math.exp %152 : vector<16x64xf32>
    %154 = arith.mulf %149, %153 : vector<16x64xf32>
    %cst_61 = arith.constant 1.000000e+00 : f32
    %155 = vector.broadcast %cst_61 : f32 to vector<16x64xf32>
    %156 = arith.subf %155, %154 : vector<16x64xf32>
    %157 = arith.mulf %129, %156 : vector<16x64xf32>
    %cst_62 = arith.constant 1.000000e+00 : f32
    %158 = vector.broadcast %cst_62 : f32 to vector<16x64xf32>
    %159 = arith.addf %158, %157 : vector<16x64xf32>
    %160 = arith.mulf %122, %159 : vector<16x64xf32>
    %161 = arith.truncf %160 : vector<16x64xf32> to vector<16x64xbf16>
    %cst_63 = arith.constant dense<0.000000e+00> : vector<16x32xf32>
    %162 = tpu.matmul %161, %14, %cst_63 {dimension_numbers = #tpu.dot_dimension_numbers<[1], [0], [0], [1], [0, 0, 1, 1], [], []>} : vector<16x64xbf16>, vector<64x32xbf16>, vector<16x32xf32> -> vector<16x32xf32>
    %163 = arith.addf %118, %162 : vector<16x32xf32>
    %c128 = arith.constant 128 : index
    %c0_64 = arith.constant 0 : index
    %164 = vector.load %arg1[%c128, %c0_64] : memref<152x32xf32, #tpu.memory_space<vmem>>, vector<1x32xf32>
    %cst_65 = arith.constant dense<0.000000e+00> : vector<16xf32>
    %165 = vector.multi_reduction <add>, %163, %cst_65 [1] : vector<16x32xf32> to vector<16xf32>
    %166 = vector.shape_cast %165 : vector<16xf32> to vector<16x1xf32>
    %cst_66 = arith.constant 3.200000e+01 : f32
    %167 = vector.broadcast %cst_66 : f32 to vector<16x1xf32>
    %168 = arith.divf %166, %167 : vector<16x1xf32>
    %169 = vector.broadcast %168 : vector<16x1xf32> to vector<16x32xf32>
    %170 = arith.subf %163, %169 : vector<16x32xf32>
    %171 = arith.mulf %170, %170 : vector<16x32xf32>
    %cst_67 = arith.constant dense<0.000000e+00> : vector<16xf32>
    %172 = vector.multi_reduction <add>, %171, %cst_67 [1] : vector<16x32xf32> to vector<16xf32>
    %173 = vector.shape_cast %172 : vector<16xf32> to vector<16x1xf32>
    %cst_68 = arith.constant 3.200000e+01 : f32
    %174 = vector.broadcast %cst_68 : f32 to vector<16x1xf32>
    %175 = arith.divf %173, %174 : vector<16x1xf32>
    %176 = vector.broadcast %168 : vector<16x1xf32> to vector<16x32xf32>
    %177 = arith.subf %163, %176 : vector<16x32xf32>
    %cst_69 = arith.constant 9.99999974E-6 : f32
    %178 = vector.broadcast %cst_69 : f32 to vector<16x1xf32>
    %179 = arith.addf %175, %178 : vector<16x1xf32>
    %180 = math.rsqrt %179 : vector<16x1xf32>
    %181 = vector.broadcast %180 : vector<16x1xf32> to vector<16x32xf32>
    %182 = arith.mulf %177, %181 : vector<16x32xf32>
    %183 = vector.broadcast %164 : vector<1x32xf32> to vector<16x32xf32>
    %184 = arith.mulf %182, %183 : vector<16x32xf32>
    %c160 = arith.constant 160 : index
    %c0_70 = arith.constant 0 : index
    %185 = vector.load %arg2[%c160, %c0_70] : memref<320x96xbf16, #tpu.memory_space<vmem>>, vector<32x96xbf16>
    %c192 = arith.constant 192 : index
    %c0_71 = arith.constant 0 : index
    %186 = vector.load %arg2[%c192, %c0_71] : memref<320x96xbf16, #tpu.memory_space<vmem>>, vector<32x32xbf16>
    %c224 = arith.constant 224 : index
    %c0_72 = arith.constant 0 : index
    %187 = vector.load %arg2[%c224, %c0_72] : memref<320x96xbf16, #tpu.memory_space<vmem>>, vector<32x64xbf16>
    %c256 = arith.constant 256 : index
    %c0_73 = arith.constant 0 : index
    %188 = vector.load %arg2[%c256, %c0_73] : memref<320x96xbf16, #tpu.memory_space<vmem>>, vector<64x32xbf16>
    %189 = arith.truncf %184 : vector<16x32xf32> to vector<16x32xbf16>
    %cst_74 = arith.constant dense<0.000000e+00> : vector<16x96xf32>
    %190 = tpu.matmul %189, %185, %cst_74 {dimension_numbers = #tpu.dot_dimension_numbers<[1], [0], [0], [1], [0, 0, 1, 1], [], []>} : vector<16x32xbf16>, vector<32x96xbf16>, vector<16x96xf32> -> vector<16x96xf32>
    %191 = arith.truncf %190 : vector<16x96xf32> to vector<16x96xbf16>
    %192 = vector.extract_strided_slice %191 {offsets = [0, 0], sizes = [16, 8], strides = [1, 1]} : vector<16x96xbf16> to vector<16x8xbf16>
    %cst_75 = arith.constant 3.535160e-01 : bf16
    %193 = vector.broadcast %cst_75 : bf16 to vector<16x8xbf16>
    %194 = arith.mulf %192, %193 : vector<16x8xbf16>
    %195 = vector.extract_strided_slice %191 {offsets = [0, 32], sizes = [16, 8], strides = [1, 1]} : vector<16x96xbf16> to vector<16x8xbf16>
    %196 = vector.extract_strided_slice %191 {offsets = [0, 64], sizes = [16, 8], strides = [1, 1]} : vector<16x96xbf16> to vector<16x8xbf16>
    %cst_76 = arith.constant dense<0.000000e+00> : vector<16x16xf32>
    %197 = tpu.matmul %194, %195, %cst_76 {dimension_numbers = #tpu.dot_dimension_numbers<[1], [1], [0], [0], [0, 0, 1, 0], [], []>} : vector<16x8xbf16>, vector<16x8xbf16>, vector<16x16xf32> -> vector<16x16xf32>
    %198 = arith.addf %197, %10 : vector<16x16xf32>
    %cst_77 = arith.constant dense<0xFF800000> : vector<16xf32>
    %199 = vector.multi_reduction <maximumf>, %198, %cst_77 [1] : vector<16x16xf32> to vector<16xf32>
    %200 = vector.shape_cast %199 : vector<16xf32> to vector<16x1xf32>
    %201 = vector.broadcast %200 : vector<16x1xf32> to vector<16x16xf32>
    %202 = arith.subf %198, %201 : vector<16x16xf32>
    %203 = math.exp %202 : vector<16x16xf32>
    %cst_78 = arith.constant dense<0.000000e+00> : vector<16xf32>
    %204 = vector.multi_reduction <add>, %203, %cst_78 [1] : vector<16x16xf32> to vector<16xf32>
    %205 = vector.shape_cast %204 : vector<16xf32> to vector<16x1xf32>
    %206 = vector.broadcast %205 : vector<16x1xf32> to vector<16x16xf32>
    %207 = arith.divf %203, %206 : vector<16x16xf32>
    %208 = arith.truncf %207 : vector<16x16xf32> to vector<16x16xbf16>
    %cst_79 = arith.constant dense<0.000000e+00> : vector<16x8xf32>
    %209 = tpu.matmul %208, %196, %cst_79 {dimension_numbers = #tpu.dot_dimension_numbers<[1], [0], [0], [1], [0, 0, 1, 1], [], []>} : vector<16x16xbf16>, vector<16x8xbf16>, vector<16x8xf32> -> vector<16x8xf32>
    %c0_80 = arith.constant 0 : index
    %c0_81 = arith.constant 0 : index
    %210 = vector.load %arg4[%c0_80, %c0_81] : memref<16x32xf32, #tpu.memory_space<vmem>>, vector<16x8xf32>
    tpu.vector_store %arg4[%c0_80, %c0_81], %209 {strides = array<i32>} : memref<16x32xf32, #tpu.memory_space<vmem>>, vector<16x8xf32>,
    %211 = vector.extract_strided_slice %191 {offsets = [0, 8], sizes = [16, 8], strides = [1, 1]} : vector<16x96xbf16> to vector<16x8xbf16>
    %cst_82 = arith.constant 3.535160e-01 : bf16
    %212 = vector.broadcast %cst_82 : bf16 to vector<16x8xbf16>
    %213 = arith.mulf %211, %212 : vector<16x8xbf16>
    %214 = vector.extract_strided_slice %191 {offsets = [0, 40], sizes = [16, 8], strides = [1, 1]} : vector<16x96xbf16> to vector<16x8xbf16>
    %215 = vector.extract_strided_slice %191 {offsets = [0, 72], sizes = [16, 8], strides = [1, 1]} : vector<16x96xbf16> to vector<16x8xbf16>
    %cst_83 = arith.constant dense<0.000000e+00> : vector<16x16xf32>
    %216 = tpu.matmul %213, %214, %cst_83 {dimension_numbers = #tpu.dot_dimension_numbers<[1], [1], [0], [0], [0, 0, 1, 0], [], []>} : vector<16x8xbf16>, vector<16x8xbf16>, vector<16x16xf32> -> vector<16x16xf32>
    %217 = arith.addf %216, %10 : vector<16x16xf32>
    %cst_84 = arith.constant dense<0xFF800000> : vector<16xf32>
    %218 = vector.multi_reduction <maximumf>, %217, %cst_84 [1] : vector<16x16xf32> to vector<16xf32>
    %219 = vector.shape_cast %218 : vector<16xf32> to vector<16x1xf32>
    %220 = vector.broadcast %219 : vector<16x1xf32> to vector<16x16xf32>
    %221 = arith.subf %217, %220 : vector<16x16xf32>
    %222 = math.exp %221 : vector<16x16xf32>
    %cst_85 = arith.constant dense<0.000000e+00> : vector<16xf32>
    %223 = vector.multi_reduction <add>, %222, %cst_85 [1] : vector<16x16xf32> to vector<16xf32>
    %224 = vector.shape_cast %223 : vector<16xf32> to vector<16x1xf32>
    %225 = vector.broadcast %224 : vector<16x1xf32> to vector<16x16xf32>
    %226 = arith.divf %222, %225 : vector<16x16xf32>
    %227 = arith.truncf %226 : vector<16x16xf32> to vector<16x16xbf16>
    %cst_86 = arith.constant dense<0.000000e+00> : vector<16x8xf32>
    %228 = tpu.matmul %227, %215, %cst_86 {dimension_numbers = #tpu.dot_dimension_numbers<[1], [0], [0], [1], [0, 0, 1, 1], [], []>} : vector<16x16xbf16>, vector<16x8xbf16>, vector<16x8xf32> -> vector<16x8xf32>
    %c0_87 = arith.constant 0 : index
    %c8_88 = arith.constant 8 : index
    %229 = vector.load %arg4[%c0_87, %c8_88] : memref<16x32xf32, #tpu.memory_space<vmem>>, vector<16x8xf32>
    tpu.vector_store %arg4[%c0_87, %c8_88], %228 {strides = array<i32>} : memref<16x32xf32, #tpu.memory_space<vmem>>, vector<16x8xf32>,
    %230 = vector.extract_strided_slice %191 {offsets = [0, 16], sizes = [16, 8], strides = [1, 1]} : vector<16x96xbf16> to vector<16x8xbf16>
    %cst_89 = arith.constant 3.535160e-01 : bf16
    %231 = vector.broadcast %cst_89 : bf16 to vector<16x8xbf16>
    %232 = arith.mulf %230, %231 : vector<16x8xbf16>
    %233 = vector.extract_strided_slice %191 {offsets = [0, 48], sizes = [16, 8], strides = [1, 1]} : vector<16x96xbf16> to vector<16x8xbf16>
    %234 = vector.extract_strided_slice %191 {offsets = [0, 80], sizes = [16, 8], strides = [1, 1]} : vector<16x96xbf16> to vector<16x8xbf16>
    %cst_90 = arith.constant dense<0.000000e+00> : vector<16x16xf32>
    %235 = tpu.matmul %232, %233, %cst_90 {dimension_numbers = #tpu.dot_dimension_numbers<[1], [1], [0], [0], [0, 0, 1, 0], [], []>} : vector<16x8xbf16>, vector<16x8xbf16>, vector<16x16xf32> -> vector<16x16xf32>
    %236 = arith.addf %235, %10 : vector<16x16xf32>
    %cst_91 = arith.constant dense<0xFF800000> : vector<16xf32>
    %237 = vector.multi_reduction <maximumf>, %236, %cst_91 [1] : vector<16x16xf32> to vector<16xf32>
    %238 = vector.shape_cast %237 : vector<16xf32> to vector<16x1xf32>
    %239 = vector.broadcast %238 : vector<16x1xf32> to vector<16x16xf32>
    %240 = arith.subf %236, %239 : vector<16x16xf32>
    %241 = math.exp %240 : vector<16x16xf32>
    %cst_92 = arith.constant dense<0.000000e+00> : vector<16xf32>
    %242 = vector.multi_reduction <add>, %241, %cst_92 [1] : vector<16x16xf32> to vector<16xf32>
    %243 = vector.shape_cast %242 : vector<16xf32> to vector<16x1xf32>
    %244 = vector.broadcast %243 : vector<16x1xf32> to vector<16x16xf32>
    %245 = arith.divf %241, %244 : vector<16x16xf32>
    %246 = arith.truncf %245 : vector<16x16xf32> to vector<16x16xbf16>
    %cst_93 = arith.constant dense<0.000000e+00> : vector<16x8xf32>
    %247 = tpu.matmul %246, %234, %cst_93 {dimension_numbers = #tpu.dot_dimension_numbers<[1], [0], [0], [1], [0, 0, 1, 1], [], []>} : vector<16x16xbf16>, vector<16x8xbf16>, vector<16x8xf32> -> vector<16x8xf32>
    %c0_94 = arith.constant 0 : index
    %c16_95 = arith.constant 16 : index
    %248 = vector.load %arg4[%c0_94, %c16_95] : memref<16x32xf32, #tpu.memory_space<vmem>>, vector<16x8xf32>
    tpu.vector_store %arg4[%c0_94, %c16_95], %247 {strides = array<i32>} : memref<16x32xf32, #tpu.memory_space<vmem>>, vector<16x8xf32>,
    %249 = vector.extract_strided_slice %191 {offsets = [0, 24], sizes = [16, 8], strides = [1, 1]} : vector<16x96xbf16> to vector<16x8xbf16>
    %cst_96 = arith.constant 3.535160e-01 : bf16
    %250 = vector.broadcast %cst_96 : bf16 to vector<16x8xbf16>
    %251 = arith.mulf %249, %250 : vector<16x8xbf16>
    %252 = vector.extract_strided_slice %191 {offsets = [0, 56], sizes = [16, 8], strides = [1, 1]} : vector<16x96xbf16> to vector<16x8xbf16>
    %253 = vector.extract_strided_slice %191 {offsets = [0, 88], sizes = [16, 8], strides = [1, 1]} : vector<16x96xbf16> to vector<16x8xbf16>
    %cst_97 = arith.constant dense<0.000000e+00> : vector<16x16xf32>
    %254 = tpu.matmul %251, %252, %cst_97 {dimension_numbers = #tpu.dot_dimension_numbers<[1], [1], [0], [0], [0, 0, 1, 0], [], []>} : vector<16x8xbf16>, vector<16x8xbf16>, vector<16x16xf32> -> vector<16x16xf32>
    %255 = arith.addf %254, %10 : vector<16x16xf32>
    %cst_98 = arith.constant dense<0xFF800000> : vector<16xf32>
    %256 = vector.multi_reduction <maximumf>, %255, %cst_98 [1] : vector<16x16xf32> to vector<16xf32>
    %257 = vector.shape_cast %256 : vector<16xf32> to vector<16x1xf32>
    %258 = vector.broadcast %257 : vector<16x1xf32> to vector<16x16xf32>
    %259 = arith.subf %255, %258 : vector<16x16xf32>
    %260 = math.exp %259 : vector<16x16xf32>
    %cst_99 = arith.constant dense<0.000000e+00> : vector<16xf32>
    %261 = vector.multi_reduction <add>, %260, %cst_99 [1] : vector<16x16xf32> to vector<16xf32>
    %262 = vector.shape_cast %261 : vector<16xf32> to vector<16x1xf32>
    %263 = vector.broadcast %262 : vector<16x1xf32> to vector<16x16xf32>
    %264 = arith.divf %260, %263 : vector<16x16xf32>
    %265 = arith.truncf %264 : vector<16x16xf32> to vector<16x16xbf16>
    %cst_100 = arith.constant dense<0.000000e+00> : vector<16x8xf32>
    %266 = tpu.matmul %265, %253, %cst_100 {dimension_numbers = #tpu.dot_dimension_numbers<[1], [0], [0], [1], [0, 0, 1, 1], [], []>} : vector<16x16xbf16>, vector<16x8xbf16>, vector<16x8xf32> -> vector<16x8xf32>
    %c0_101 = arith.constant 0 : index
    %c24_102 = arith.constant 24 : index
    %267 = vector.load %arg4[%c0_101, %c24_102] : memref<16x32xf32, #tpu.memory_space<vmem>>, vector<16x8xf32>
    tpu.vector_store %arg4[%c0_101, %c24_102], %266 {strides = array<i32>} : memref<16x32xf32, #tpu.memory_space<vmem>>, vector<16x8xf32>,
    %c0_103 = arith.constant 0 : index
    %c0_104 = arith.constant 0 : index
    %268 = vector.load %arg4[%c0_103, %c0_104] : memref<16x32xf32, #tpu.memory_space<vmem>>, vector<16x32xf32>
    %269 = arith.truncf %268 : vector<16x32xf32> to vector<16x32xbf16>
    %cst_105 = arith.constant dense<0.000000e+00> : vector<16x32xf32>
    %270 = tpu.matmul %269, %186, %cst_105 {dimension_numbers = #tpu.dot_dimension_numbers<[1], [0], [0], [1], [0, 0, 1, 1], [], []>} : vector<16x32xbf16>, vector<32x32xbf16>, vector<16x32xf32> -> vector<16x32xf32>
    %271 = arith.addf %184, %270 : vector<16x32xf32>
    %c120 = arith.constant 120 : index
    %c0_106 = arith.constant 0 : index
    %272 = vector.load %arg1[%c120, %c0_106] : memref<152x32xf32, #tpu.memory_space<vmem>>, vector<1x32xf32>
    %cst_107 = arith.constant dense<0.000000e+00> : vector<16xf32>
    %273 = vector.multi_reduction <add>, %271, %cst_107 [1] : vector<16x32xf32> to vector<16xf32>
    %274 = vector.shape_cast %273 : vector<16xf32> to vector<16x1xf32>
    %cst_108 = arith.constant 3.200000e+01 : f32
    %275 = vector.broadcast %cst_108 : f32 to vector<16x1xf32>
    %276 = arith.divf %274, %275 : vector<16x1xf32>
    %277 = vector.broadcast %276 : vector<16x1xf32> to vector<16x32xf32>
    %278 = arith.subf %271, %277 : vector<16x32xf32>
    %279 = arith.mulf %278, %278 : vector<16x32xf32>
    %cst_109 = arith.constant dense<0.000000e+00> : vector<16xf32>
    %280 = vector.multi_reduction <add>, %279, %cst_109 [1] : vector<16x32xf32> to vector<16xf32>
    %281 = vector.shape_cast %280 : vector<16xf32> to vector<16x1xf32>
    %cst_110 = arith.constant 3.200000e+01 : f32
    %282 = vector.broadcast %cst_110 : f32 to vector<16x1xf32>
    %283 = arith.divf %281, %282 : vector<16x1xf32>
    %284 = vector.broadcast %276 : vector<16x1xf32> to vector<16x32xf32>
    %285 = arith.subf %271, %284 : vector<16x32xf32>
    %cst_111 = arith.constant 9.99999974E-6 : f32
    %286 = vector.broadcast %cst_111 : f32 to vector<16x1xf32>
    %287 = arith.addf %283, %286 : vector<16x1xf32>
    %288 = math.rsqrt %287 : vector<16x1xf32>
    %289 = vector.broadcast %288 : vector<16x1xf32> to vector<16x32xf32>
    %290 = arith.mulf %285, %289 : vector<16x32xf32>
    %291 = vector.broadcast %272 : vector<1x32xf32> to vector<16x32xf32>
    %292 = arith.mulf %290, %291 : vector<16x32xf32>
    %293 = arith.truncf %292 : vector<16x32xf32> to vector<16x32xbf16>
    %cst_112 = arith.constant dense<0.000000e+00> : vector<16x64xf32>
    %294 = tpu.matmul %293, %187, %cst_112 {dimension_numbers = #tpu.dot_dimension_numbers<[1], [0], [0], [1], [0, 0, 1, 1], [], []>} : vector<16x32xbf16>, vector<32x64xbf16>, vector<16x64xf32> -> vector<16x64xf32>
    %cst_113 = arith.constant 5.000000e-01 : f32
    %295 = vector.broadcast %cst_113 : f32 to vector<16x64xf32>
    %296 = arith.mulf %295, %294 : vector<16x64xf32>
    %cst_114 = arith.constant 0.707106769 : f32
    %297 = vector.broadcast %cst_114 : f32 to vector<16x64xf32>
    %298 = arith.mulf %294, %297 : vector<16x64xf32>
    %cst_115 = arith.constant 0.000000e+00 : f32
    %299 = vector.broadcast %cst_115 : f32 to vector<16x64xf32>
    %300 = arith.cmpf oge, %298, %299 : vector<16x64xf32>
    %cst_116 = arith.constant 1.000000e+00 : f32
    %cst_117 = arith.constant -1.000000e+00 : f32
    %301 = vector.broadcast %cst_116 : f32 to vector<16x64xf32>
    %302 = vector.broadcast %cst_117 : f32 to vector<16x64xf32>
    %303 = arith.select %300, %301, %302 : vector<16x64xi1>, vector<16x64xf32>
    %304 = math.absf %298 : vector<16x64xf32>
    %cst_118 = arith.constant 0.327591091 : f32
    %305 = vector.broadcast %cst_118 : f32 to vector<16x64xf32>
    %306 = arith.mulf %305, %304 : vector<16x64xf32>
    %cst_119 = arith.constant 1.000000e+00 : f32
    %307 = vector.broadcast %cst_119 : f32 to vector<16x64xf32>
    %308 = arith.addf %307, %306 : vector<16x64xf32>
    %309 = tpu.reciprocal %308 {approx = true} : vector<16x64xf32> -> vector<16x64xf32>
    %cst_120 = arith.constant 1.06140542 : f32
    %310 = vector.broadcast %cst_120 : f32 to vector<16x64xf32>
    %311 = arith.mulf %310, %309 : vector<16x64xf32>
    %cst_121 = arith.constant -1.45315206 : f32
    %312 = vector.broadcast %cst_121 : f32 to vector<16x64xf32>
    %313 = arith.addf %311, %312 : vector<16x64xf32>
    %314 = arith.mulf %313, %309 : vector<16x64xf32>
    %cst_122 = arith.constant 1.42141378 : f32
    %315 = vector.broadcast %cst_122 : f32 to vector<16x64xf32>
    %316 = arith.addf %314, %315 : vector<16x64xf32>
    %317 = arith.mulf %316, %309 : vector<16x64xf32>
    %cst_123 = arith.constant -0.284496725 : f32
    %318 = vector.broadcast %cst_123 : f32 to vector<16x64xf32>
    %319 = arith.addf %317, %318 : vector<16x64xf32>
    %320 = arith.mulf %319, %309 : vector<16x64xf32>
    %cst_124 = arith.constant 0.254829586 : f32
    %321 = vector.broadcast %cst_124 : f32 to vector<16x64xf32>
    %322 = arith.addf %320, %321 : vector<16x64xf32>
    %323 = arith.mulf %322, %309 : vector<16x64xf32>
    %cst_125 = arith.constant 0.000000e+00 : f32
    %324 = vector.broadcast %cst_125 : f32 to vector<16x64xf32>
    %325 = arith.subf %324, %304 : vector<16x64xf32>
    %326 = arith.mulf %325, %304 : vector<16x64xf32>
    %327 = math.exp %326 : vector<16x64xf32>
    %328 = arith.mulf %323, %327 : vector<16x64xf32>
    %cst_126 = arith.constant 1.000000e+00 : f32
    %329 = vector.broadcast %cst_126 : f32 to vector<16x64xf32>
    %330 = arith.subf %329, %328 : vector<16x64xf32>
    %331 = arith.mulf %303, %330 : vector<16x64xf32>
    %cst_127 = arith.constant 1.000000e+00 : f32
    %332 = vector.broadcast %cst_127 : f32 to vector<16x64xf32>
    %333 = arith.addf %332, %331 : vector<16x64xf32>
    %334 = arith.mulf %296, %333 : vector<16x64xf32>
    %335 = arith.truncf %334 : vector<16x64xf32> to vector<16x64xbf16>
    %cst_128 = arith.constant dense<0.000000e+00> : vector<16x32xf32>
    %336 = tpu.matmul %335, %188, %cst_128 {dimension_numbers = #tpu.dot_dimension_numbers<[1], [0], [0], [1], [0, 0, 1, 1], [], []>} : vector<16x64xbf16>, vector<64x32xbf16>, vector<16x32xf32> -> vector<16x32xf32>
    %337 = arith.addf %292, %336 : vector<16x32xf32>
    %c136 = arith.constant 136 : index
    %c0_129 = arith.constant 0 : index
    %338 = vector.load %arg1[%c136, %c0_129] : memref<152x32xf32, #tpu.memory_space<vmem>>, vector<1x32xf32>
    %cst_130 = arith.constant dense<0.000000e+00> : vector<16xf32>
    %339 = vector.multi_reduction <add>, %337, %cst_130 [1] : vector<16x32xf32> to vector<16xf32>
    %340 = vector.shape_cast %339 : vector<16xf32> to vector<16x1xf32>
    %cst_131 = arith.constant 3.200000e+01 : f32
    %341 = vector.broadcast %cst_131 : f32 to vector<16x1xf32>
    %342 = arith.divf %340, %341 : vector<16x1xf32>
    %343 = vector.broadcast %342 : vector<16x1xf32> to vector<16x32xf32>
    %344 = arith.subf %337, %343 : vector<16x32xf32>
    %345 = arith.mulf %344, %344 : vector<16x32xf32>
    %cst_132 = arith.constant dense<0.000000e+00> : vector<16xf32>
    %346 = vector.multi_reduction <add>, %345, %cst_132 [1] : vector<16x32xf32> to vector<16xf32>
    %347 = vector.shape_cast %346 : vector<16xf32> to vector<16x1xf32>
    %cst_133 = arith.constant 3.200000e+01 : f32
    %348 = vector.broadcast %cst_133 : f32 to vector<16x1xf32>
    %349 = arith.divf %347, %348 : vector<16x1xf32>
    %350 = vector.broadcast %342 : vector<16x1xf32> to vector<16x32xf32>
    %351 = arith.subf %337, %350 : vector<16x32xf32>
    %cst_134 = arith.constant 9.99999974E-6 : f32
    %352 = vector.broadcast %cst_134 : f32 to vector<16x1xf32>
    %353 = arith.addf %349, %352 : vector<16x1xf32>
    %354 = math.rsqrt %353 : vector<16x1xf32>
    %355 = vector.broadcast %354 : vector<16x1xf32> to vector<16x32xf32>
    %356 = arith.mulf %351, %355 : vector<16x32xf32>
    %357 = vector.broadcast %338 : vector<1x32xf32> to vector<16x32xf32>
    %358 = arith.mulf %356, %357 : vector<16x32xf32>
    %c80 = arith.constant 80 : index
    %c0_135 = arith.constant 0 : index
    %359 = vector.load %arg1[%c80, %c0_135] : memref<152x32xf32, #tpu.memory_space<vmem>>, vector<16x32xf32>
    %360 = arith.mulf %358, %359 : vector<16x32xf32>
    %c144 = arith.constant 144 : index
    %c0_136 = arith.constant 0 : index
    %361 = vector.load %arg1[%c144, %c0_136] : memref<152x32xf32, #tpu.memory_space<vmem>>, vector<2x16xf32>
    %cst_137 = arith.constant dense<0.000000e+00> : vector<2x32xf32>
    %362 = tpu.matmul %361, %360, %cst_137 {dimension_numbers = #tpu.dot_dimension_numbers<[1], [0], [0], [1], [0, 0, 1, 1], [], []>} : vector<2x16xf32>, vector<16x32xf32>, vector<2x32xf32> -> vector<2x32xf32>
    %cst_138 = arith.constant dense<0.000000e+00> : vector<2xf32>
    %363 = vector.multi_reduction <add>, %362, %cst_138 [1] : vector<2x32xf32> to vector<2xf32>
    %364 = vector.shape_cast %363 : vector<2xf32> to vector<2x1xf32>
    %cst_139 = arith.constant 0.000000e+00 : f32
    %365 = vector.broadcast %cst_139 : f32 to vector<2x1xf32>
    %366 = arith.subf %365, %364 : vector<2x1xf32>
    %367 = math.exp %366 : vector<2x1xf32>
    %cst_140 = arith.constant 1.000000e+00 : f32
    %368 = vector.broadcast %cst_140 : f32 to vector<2x1xf32>
    %369 = arith.addf %368, %367 : vector<2x1xf32>
    %cst_141 = arith.constant 1.000000e+00 : f32
    %370 = vector.broadcast %cst_141 : f32 to vector<2x1xf32>
    %371 = arith.divf %370, %369 : vector<2x1xf32>
    %c0_142 = arith.constant 0 : index
    %c0_143 = arith.constant 0 : index
    %372 = vector.load %arg3[%c0_142, %c0_143] : memref<2x1xf32, #tpu.memory_space<vmem>>, vector<2x1xf32>
    tpu.vector_store %arg3[%c0_142, %c0_143], %371 {strides = array<i32>} : memref<2x1xf32, #tpu.memory_space<vmem>>, vector<2x1xf32>,
    return
  }
}

</mosaic_0001>

<bundles_post_ra>
// kernel: tpu_custom_call.1
= control target key start
LH: loop header
LB: loop body
LE: loop exit
PB: predicated region body
PF: predicated region fallthrough
CT: control target
= control target key end

     0   :  { %v2510_v0 = vmov 0   ;;  %v2511_v9 = vmov 0.0   ;;  %v18_v17 = vlaneseq  ;;  %vm42_vm0 = vcmask 523264   ;;  %s2513_s12 = smov 96   ;;  %s2514_s13 = smov 120   ;;  %s2982_s0 = inlined_call_operand.vmem [shape: s32[16,1], index: 0, kind: input, shape index: {}]   ;;  %s2983_s1 = inlined_call_operand.vmem [shape: f32[152,32], index: 1, kind: input, shape index: {}]   ;;  %s2984_s2 = inlined_call_operand.vmem [shape: bf16[320,96], index: 2, kind: input, shape index: {}]   ;;  %s2985_s3 = inlined_call_operand.vmem [shape: f32[2,1], index: 3, kind: output, shape index: {}]  }
   0x1   :  { %2389 = vset.pattern.permute.xlu0 %v2510_v0  ;;  %v16_v1 = vld [vmem:[%s2982_s0] sm:$0xff]  ;;  %v33_v3 = vld [vmem:[%s2983_s1 + $0x8] sm:$0xff]  ;;  %v34_v4 = vld [vmem:[%s2983_s1 + $0x10] sm:$0xff]  ;;  %2176 = vmatprep.subr.bf16.mxu1 %v2511_v9  ;;  %vm2512_vm3 = vmmov 0   ;;  %vm159_vm4 = vcmask 261120   ;;  %s2515_s14 = smov 88  }
   0x2   :  { %v32_v2 = vld [vmem:[%s2983_s1] sm:$0xff]  ;;  %21 = vperm.xlu0 %2389, %v16_v1   ;;  %v35_v5 = vld [vmem:[%s2983_s1 + $0x18] sm:$0xff]  ;;  %v17_v6 = vld [vmem:[%s2982_s0 + $0x8] sm:$0xff]  ;;  %v19_v18 = vand.u32 127, %v18_v17  ;;  %2180 = vmatprep.mubr.msk.bf16.mxu1 %vm2512_vm3, %v2511_v9  ;;  %s2516_s15 = smov 112   ;;  %s2517_s16 = smov 80  }
   0x3   :  { %v2351_v7 = vpack.c.bf16 %v33_v3, %v32_v2  ;;  %v2355_v8 = vpack.c.bf16 %v35_v5, %v34_v4  ;;  %v36_v10 = vld [vmem:[%s2983_s1 + $0x20] sm:$0xff]  ;;  %v37_v11 = vld [vmem:[%s2983_s1 + $0x28] sm:$0xff]  ;;  %v38_v13 = vld [vmem:[%s2983_s1 + $0x30] sm:$0xff]  ;;  %s2518_s17 = smov 104   ;;  %s2519_s18 = smov 72   ;;  %vm209_vm5 = vcmask 64512  }
   0x4   :  { %v2359_v12 = vpack.c.bf16 %v37_v11, %v36_v10  ;;  %v39_v14 = vld [vmem:[%s2983_s1 + $0x38] sm:$0xff]  ;;  %v2390_v15 = vld [vmem:[%s2984_s2] sm:$0xff]   ;;  %v2391_v23 = vld [vmem:[%s2984_s2 + $0x8] sm:$0xff]   ;;  %vm257_vm6 = vcmask 130048   ;;  %s2520_s23 = smov 56   ;;  %s2521_s24 = smov 64  }
   0x5   :  { %2352 = vmatprep.subr.bf16.mxu0 %v2351_v7  ;;  %v2363_v16 = vpack.c.bf16 %v39_v14, %v38_v13  ;;  %2177 = vmatpush3.bf16.msra.mxu1 %v2390_v15  ;;  %v41_v24 = vld [vmem:[%s2983_s1 + $0x48] sm:$0xff]  ;;  %v40_v25 = vld [vmem:[%s2983_s1 + $0x40] sm:$0xff]  ;;  %s2522_s25 = smov 48   ;;  %s2523_s26 = smov 40   ;;  %vm460_vm7 = vcmask 130112   ;;  %vm592_vm8 = vcmask 195712  }
   0x6   :  { %24 = vperm.xlu0 %2389, %v17_v6   ;;  %2354 = vmatpush3.bf16.msra.mxu0 %v2351_v7  ;;  %v2649_v48 = vld [vmem:[%s2983_s1 + $0x60] sm:$0xff]  ;;  %v2654_v50 = vld [vmem:[%s2983_s1 + $0x68] sm:$0xff]  ;;  %s2524_s27 = smov 8   ;;  %s2525_s4 = smov 16   ;;  %vm724_vm9 = vcmask 261312   ;;  %vm2015_vm14 = vcmask 254976  }
   0x7   :  { %2356 = vmatprep.subr.bf16.mxu0 %v2355_v8  ;;  %2178 = vmatprep.subr.bf16.mxu1 %v2511_v9  ;;  %s2526_s5 = smov 24   ;;  %vm2025_vm15 = vcmask 1024  }
   0x9   :  { %2179 = vmatpush3.bf16.msra.mxu1 %v2391_v23 }
   0xa   :  { %2358 = vmatpush3.bf16.msra.mxu0 %v2355_v8  ;;  %2184 = vmatprep.subr.bf16.mxu1 %v2511_v9 }
   0xb   :  { %2360 = vmatprep.subr.bf16.mxu0 %v2359_v12 }
   0xe   :  { %2362 = vmatpush3.bf16.msra.mxu0 %v2359_v12 }
   0xf   :  { %2364 = vmatprep.subr.bf16.mxu0 %v2363_v16 }
  0x12   :  { %2366 = vmatpush3.bf16.msra.mxu0 %v2363_v16 }
  0x13   :  { %2190 = vmatprep.subr.bf16.mxu0 %v2511_v9 }
  0x81   :  { %v22_v19 = vpop.permute.xlu0 %21 }
  0x82   :  { %vm26_vm1 = vcmp.eq.s32.totalorder %v19_v18, %v22_v19 }
  0x83   :  { %v2031_v20 = vsel %vm26_vm1, 1.0, %v2511_v9 }
  0x84   :  { %2173 = vmatprep.mubr.msk.f32.mxu0 %vm42_vm0, %v2031_v20 }
  0x85   :  { %v25_v21 = vpop.permute.xlu0 %24 }
  0x86   :  { %vm27_vm2 = vcmp.eq.s32.totalorder %v19_v18, %v25_v21 }
  0x87   :  { %v2032_v22 = vsel %vm27_vm2, 1.0, %v2511_v9 }
  0x88   :  { %2174 = vmatmul.mubr.msk.f32.vlgmr.msra.gmra.mrb[0].mxu0 %vm42_vm0, %v2032_v22 }
  0x89   :  { %2192 = vmatprep.mubr.msk.bf16.mxu0 %vm2512_vm3, %v2511_v9 }
 0x15b   :  { %v2175_v26 = vpop.f32.mrb[0].mxu0 }
 0x15c   :  { %v2603_v27 = vadd.f32 %v2175_v26, %v41_v24  ;;  %v115_v28 = vpop.f32.mrb[1].mxu0 }
 0x15d   :  { %v2605_v29 = vadd.f32 %v115_v28, %v40_v25 }
 0x15f   :  { %v146_v30 = vpack.c.bf16 %v2603_v27, %v2605_v29 }
 0x161   :  { %2181 = vmatmul.mubr.msk.bf16.vlgmr.msra.gmra.mrb[0].mxu1 %vm159_vm4, %v146_v30 }
 0x162   :  { %2186 = vmatprep.mubr.msk.bf16.mxu1 %vm2512_vm3, %v2511_v9 }
 0x234   :  { %v197_v31 = vpop.f32.mrb[0].mxu1 }
 0x235   :  { %v2182_v32 = vpop.f32.mrb[1].mxu1 }
 0x236   :  { %v200_v33 = vpop.f32.mrb[2].mxu1 }
 0x237   :  { %v2612_v34 = vpack.c.bf16 %v200_v33, %v197_v31  ;;  %v2183_v35 = vpop.f32.mrb[3].mxu1 }
 0x239   :  { %207 = vrot.lane.b32.xlu1 %v2612_v34, %s2513_s12  ;;  %v205_v36 = vmul.bf16 1052065461, %v2612_v34 }
 0x23b   :  { %331 = vrot.lane.b32.xlu0 %v205_v36, %s2514_s13 }
 0x23d   :  { %333 = vrot.lane.b32.xlu1 %v2612_v34, %s2515_s14 }
 0x23f   :  { %463 = vrot.lane.b32.xlu0 %v205_v36, %s2516_s15 }
 0x241   :  { %465 = vrot.lane.b32.xlu1 %v2612_v34, %s2517_s16 }
 0x243   :  { %595 = vrot.lane.b32.xlu0 %v205_v36, %s2518_s17 }
 0x245   :  { %597 = vrot.lane.b32.xlu1 %v2612_v34, %s2519_s18 }
 0x2ab   :  { %v208_v37 = vpop.permute.xlu1 %207 }
 0x2ac   :  { %v214_v38 = vsel %vm209_vm5, %v208_v37, 0 }
 0x2ad   :  { %2185 = vmatpush3.bf16.xpose.msra.mxu1 %v214_v38  ;;  %v332_v42 = vpop.permute.xlu0 %331 }
 0x2ae   :  { %2196 = vmatprep.subr.bf16.mxu1 %v2511_v9 }
 0x2af   :  { %v334_v39 = vpop.permute.xlu1 %333 }
 0x2b0   :  { %v339_v40 = vsel %vm209_vm5, %v334_v39, 0 }
 0x2b1   :  { %v464_v45 = vpop.permute.xlu0 %463 }
 0x2b3   :  { %v466_v41 = vpop.permute.xlu1 %465 }
 0x2b4   :  { %2187 = vmatmul.mubr.msk.bf16.vlgmr.msra.gmra.mrb[4].mxu1 %vm209_vm5, %v205_v36  ;;  %v471_v43 = vsel %vm209_vm5, %v466_v41, 0 }
 0x2b5   :  { %2197 = vmatpush3.bf16.xpose.msra.mxu1 %v339_v40  ;;  %2198 = vmatprep.mubr.msk.bf16.mxu1 %vm2512_vm3, %v2511_v9  ;;  %v596_v47 = vpop.permute.xlu0 %595 }
 0x2b6   :  { %2208 = vmatprep.subr.bf16.mxu1 %v2511_v9 }
 0x2b7   :  { %v598_v44 = vpop.permute.xlu1 %597 }
 0x2b8   :  { %v603_v46 = vsel %vm209_vm5, %v598_v44, 0 }
 0x2bc   :  { %2199 = vmatmul.mubr.msk.bf16.vlgmr.msra.gmra.mrb[8].mxu1 %vm209_vm5, %v332_v42 }
 0x2bd   :  { %2209 = vmatpush3.bf16.xpose.msra.mxu1 %v471_v43  ;;  %2210 = vmatprep.mubr.msk.bf16.mxu1 %vm2512_vm3, %v2511_v9 }
 0x2be   :  { %2220 = vmatprep.subr.bf16.mxu1 %v2511_v9 }
 0x2c4   :  { %2211 = vmatmul.mubr.msk.bf16.vlgmr.msra.gmra.mrb[12].mxu1 %vm209_vm5, %v464_v45 }
 0x2c5   :  { %2221 = vmatpush3.bf16.xpose.msra.mxu1 %v603_v46  ;;  %2222 = vmatprep.mubr.msk.bf16.mxu1 %vm2512_vm3, %v2511_v9 }
 0x2c6   :  { %2232 = vmatprep.subr.bf16.mxu1 %v2511_v9 }
 0x2cc   :  { %2223 = vmatmul.mubr.msk.bf16.vlgmr.msra.gmra.mrb[16].mxu1 %vm209_vm5, %v596_v47 }
 0x2cd   :  { %2236 = vmatprep.mubr.msk.bf16.mxu1 %vm2512_vm3, %v2511_v9 }
 0x387   :  { %v250_v49 = vpop.f32.mrb[4].mxu1 }
 0x388   :  { %v251_v51 = vadd.f32 %v250_v49, %v2649_v48  ;;  %v2188_v52 = vpop.f32.mrb[5].mxu1 }
 0x389   :  { %v253_v53 = vpop.f32.mrb[6].mxu1 }
 0x38a   :  { %v254_v54 = vadd.f32 %v253_v53, %v2654_v50  ;;  %v2189_v55 = vpop.f32.mrb[7].mxu1  ;;  %v258_v56 = vsel %vm257_vm6, %v251_v51, -inf }
 0x38b   :  { %259 = vmax.xlane.f32.xlu1 %v258_v56 }
 0x38c   :  { %v261_v57 = vsel %vm257_vm6, %v254_v54, -inf }
 0x38d   :  { %262 = vmax.xlane.f32.xlu0 %v261_v57 }
 0x38f   :  { %v375_v58 = vpop.f32.mrb[8].mxu1 }
 0x390   :  { %v376_v59 = vadd.f32 %v375_v58, %v2649_v48  ;;  %v2200_v60 = vpop.f32.mrb[9].mxu1 }
 0x391   :  { %v378_v61 = vpop.f32.mrb[10].mxu1 }
 0x392   :  { %v379_v62 = vadd.f32 %v378_v61, %v2654_v50  ;;  %v2201_v63 = vpop.f32.mrb[11].mxu1  ;;  %v382_v0 = vsel %vm257_vm6, %v376_v59, -inf }
 0x393   :  { %383 = vmax.xlane.f32.xlu0 %v382_v0 }
 0x394   :  { %v385_v1 = vsel %vm257_vm6, %v379_v62, -inf }
 0x395   :  { %386 = vmax.xlane.f32.xlu1 %v385_v1 }
 0x397   :  { %v507_v2 = vpop.f32.mrb[12].mxu1 }
 0x398   :  { %v508_v3 = vadd.f32 %v507_v2, %v2649_v48  ;;  %v2212_v4 = vpop.f32.mrb[13].mxu1 }
 0x399   :  { %v510_v5 = vpop.f32.mrb[14].mxu1 }
 0x39a   :  { %v511_v6 = vadd.f32 %v510_v5, %v2654_v50  ;;  %v2213_v7 = vpop.f32.mrb[15].mxu1  ;;  %v514_v8 = vsel %vm257_vm6, %v508_v3, -inf }
 0x39b   :  { %515 = vmax.xlane.f32.xlu0 %v514_v8 }
 0x39c   :  { %v517_v10 = vsel %vm257_vm6, %v511_v6, -inf }
 0x39d   :  { %518 = vmax.xlane.f32.xlu1 %v517_v10 }
 0x39f   :  { %v639_v11 = vpop.f32.mrb[16].mxu1 }
 0x3a0   :  { %v640_v12 = vadd.f32 %v639_v11, %v2649_v48  ;;  %v2224_v13 = vpop.f32.mrb[17].mxu1 }
 0x3a1   :  { %v642_v14 = vpop.f32.mrb[18].mxu1 }
 0x3a2   :  { %v643_v15 = vadd.f32 %v642_v14, %v2654_v50  ;;  %v2225_v16 = vpop.f32.mrb[19].mxu1  ;;  %v646_v17 = vsel %vm257_vm6, %v640_v12, -inf }
 0x3a3   :  { %647 = vmax.xlane.f32.xlu0 %v646_v17 }
 0x3a4   :  { %v649_v18 = vsel %vm257_vm6, %v643_v15, -inf }
 0x3a5   :  { %650 = vmax.xlane.f32.xlu1 %v649_v18 }
 0x418   :  { %v260_v19 = vpop.xlane.xlu1 %259 }
 0x419   :  { %v264_v20 = vsub.f32 %v251_v51, %v260_v19 }
 0x41a   :  { %v263_v21 = vpop.xlane.xlu0 %262 }
 0x41b   :  { %v266_v22 = vmul.f32 1.442695, %v264_v20  ;;  %v265_v23 = vsub.f32 %v254_v54, %v263_v21 }
 0x41d   :  { %2410 = vpow2.f32 %v266_v22  ;;  %v268_v24 = vmul.f32 1.442695, %v265_v23 }
 0x41f   :  { %2412 = vpow2.f32 %v268_v24 }
 0x420   :  { %v384_v25 = vpop.xlane.xlu0 %383 }
 0x421   :  { %v388_v26 = vsub.f32 %v376_v59, %v384_v25 }
 0x422   :  { %v387_v37 = vpop.xlane.xlu1 %386 }
 0x423   :  { %v390_v28 = vmul.f32 1.442695, %v388_v26  ;;  %v389_v38 = vsub.f32 %v379_v62, %v387_v37 }
 0x425   :  { %2414 = vpow2.f32 %v390_v28  ;;  %v392_v41 = vmul.f32 1.442695, %v389_v38 }
 0x427   :  { %v2411_v30 = vpop.eup %2410  ;;  %2416 = vpow2.f32 %v392_v41 }
 0x428   :  { %v270_v31 = vsel %vm257_vm6, %v2411_v30, 0.0  ;;  %v516_v40 = vpop.xlane.xlu0 %515 }
 0x429   :  { %v2413_v32 = vpop.eup %2412  ;;  %271 = vadd.xlane.f32.xlu0 %v270_v31  ;;  %v520_v44 = vsub.f32 %v508_v3, %v516_v40 }
 0x42a   :  { %v273_v33 = vsel %vm257_vm6, %v2413_v32, 0.0  ;;  %v519_v39 = vpop.xlane.xlu1 %518 }
 0x42b   :  { %274 = vadd.xlane.f32.xlu1 %v273_v33  ;;  %v521_v42 = vsub.f32 %v511_v6, %v519_v39  ;;  %v522_v49 = vmul.f32 1.442695, %v520_v44 }
 0x42d   :  { %v524_v46 = vmul.f32 1.442695, %v521_v42 }
 0x42f   :  { %v2674_v35 = vpop.eup %2414  ;;  %2418 = vpow2.f32 %v524_v46 }
 0x430   :  { %v394_v36 = vsel %vm257_vm6, %v2674_v35, 0.0  ;;  %v648_v45 = vpop.xlane.xlu0 %647  ;;  %2420 = vpow2.f32 %v522_v49 }
 0x431   :  { %395 = vadd.xlane.f32.xlu0 %v394_v36  ;;  %v652_v51 = vsub.f32 %v640_v12, %v648_v45  ;;  %v2417_v54 = vpop.eup %2416  ;;  %v2393_v45 = vld [vmem:[%s2984_s2 + $0x18] sm:$0xff]  }
 0x432   :  { %v651_v43 = vpop.xlane.xlu1 %650  ;;  %v397_v55 = vsel %vm257_vm6, %v2417_v54, 0.0 }
 0x433   :  { %v653_v47 = vsub.f32 %v643_v15, %v651_v43  ;;  %v654_v53 = vmul.f32 1.442695, %v652_v51  ;;  %v2392_v43 = vld [vmem:[%s2984_s2 + $0x10] sm:$0xff]  }
 0x434   :  { %2233 = vmatpush3.bf16.msra.mxu1 %v2392_v43 }
 0x435   :  { %v656_v52 = vmul.f32 1.442695, %v653_v47  ;;  %2234 = vmatprep.subr.bf16.mxu1 %v2511_v9 }
 0x437   :  { %2422 = vpow2.f32 %v656_v52 }
 0x438   :  { %2424 = vpow2.f32 %v654_v53  ;;  %2235 = vmatpush3.bf16.msra.mxu1 %v2393_v45 }
 0x439   :  { %v2419_v56 = vpop.eup %2418  ;;  %2248 = vmatprep.subr.bf16.mxu1 %v2511_v9 }
 0x43a   :  { %v2421_v57 = vpop.eup %2420  ;;  %v529_v58 = vsel %vm257_vm6, %v2419_v56, 0.0 }
 0x43b   :  { %v526_v60 = vsel %vm257_vm6, %v2421_v57, 0.0 }
 0x43c   :  { %405 = vrot.lane.b32.xlu1 %v2612_v34, %s2520_s23 }
 0x441   :  { %v2684_v59 = vpop.eup %2422 }
 0x442   :  { %v2425_v61 = vpop.eup %2424  ;;  %v661_v62 = vsel %vm257_vm6, %v2684_v59, 0.0 }
 0x443   :  { %v658_v63 = vsel %vm257_vm6, %v2425_v61, 0.0 }
 0x447   :  { %281 = vrot.lane.b32.xlu0 %v2612_v34, %s2521_s24 }
 0x460   :  { %398 = vadd.xlane.f32.xlu1 %v397_v55 }
 0x464   :  { %530 = vadd.xlane.f32.xlu1 %v529_v58 }
 0x466   :  { %527 = vadd.xlane.f32.xlu0 %v526_v60 }
 0x468   :  { %662 = vadd.xlane.f32.xlu1 %v661_v62 }
 0x46a   :  { %659 = vadd.xlane.f32.xlu0 %v658_v63 }
 0x479   :  { %537 = vrot.lane.b32.xlu1 %v2612_v34, %s2522_s25 }
 0x480   :  { %669 = vrot.lane.b32.xlu0 %v2612_v34, %s2523_s26 }
 0x4b6   :  { %v272_v0 = vpop.xlane.xlu0 %271 }
 0x4b7   :  { %2426 = vrcp.f32 %v272_v0 }
 0x4b8   :  { %v275_v1 = vpop.xlane.xlu1 %274 }
 0x4b9   :  { %2428 = vrcp.f32 %v275_v1 }
 0x4bc   :  { %v406_v10 = vpop.permute.xlu1 %405 }
 0x4be   :  { %v396_v2 = vpop.xlane.xlu0 %395 }
 0x4bf   :  { %2430 = vrcp.f32 %v396_v2 }
 0x4c1   :  { %v2427_v3 = vpop.eup %2426 }
 0x4c2   :  { %v282_v4 = vpop.permute.xlu0 %281  ;;  %v277_v6 = vmul.f32 %v2427_v3, %v2411_v30 }
 0x4c3   :  { %v2429_v5 = vpop.eup %2428  ;;  %2191 = vmatpush3.bf16.msra.mxu0 %v282_v4 }
 0x4c4   :  { %v279_v7 = vmul.f32 %v2429_v5, %v2413_v32  ;;  %2202 = vmatprep.subr.bf16.mxu0 %v2511_v9 }
 0x4c6   :  { %v280_v8 = vpack.c.bf16 %v279_v7, %v277_v6 }
 0x4c8   :  { %2193 = vmatmul.mubr.msk.bf16.vlgmr.msra.gmra.mrb[4].mxu0 %vm257_vm6, %v280_v8 }
 0x4c9   :  { %2203 = vmatpush3.bf16.msra.mxu0 %v406_v10  ;;  %2204 = vmatprep.mubr.msk.bf16.mxu0 %vm2512_vm3, %v2511_v9  ;;  %v2431_v13 = vpop.eup %2430 }
 0x4ca   :  { %2214 = vmatprep.subr.bf16.mxu0 %v2511_v9  ;;  %v401_v17 = vmul.f32 %v2431_v13, %v2674_v35 }
 0x4ed   :  { %v399_v34 = vpop.xlane.xlu1 %398 }
 0x4ee   :  { %2432 = vrcp.f32 %v399_v34 }
 0x4f1   :  { %v531_v11 = vpop.xlane.xlu1 %530 }
 0x4f2   :  { %2434 = vrcp.f32 %v531_v11 }
 0x4f3   :  { %v528_v12 = vpop.xlane.xlu0 %527 }
 0x4f4   :  { %2436 = vrcp.f32 %v528_v12 }
 0x4f5   :  { %v663_v14 = vpop.xlane.xlu1 %662 }
 0x4f7   :  { %v660_v15 = vpop.xlane.xlu0 %659 }
 0x4f8   :  { %v2433_v16 = vpop.eup %2432  ;;  %2438 = vrcp.f32 %v660_v15 }
 0x4f9   :  { %v403_v18 = vmul.f32 %v2433_v16, %v2417_v54  ;;  %2440 = vrcp.f32 %v663_v14  ;;  %v538_v21 = vpop.permute.xlu1 %537  ;;  %v2394_v16 = vld [vmem:[%s2984_s2 + $0x20] sm:$0xff]  }
 0x4fb   :  { %v404_v19 = vpack.c.bf16 %v403_v18, %v401_v17  ;;  %v670_v28 = vpop.permute.xlu0 %669  ;;  %v2395_v17 = vld [vmem:[%s2984_s2 + $0x28] sm:$0xff]  }
 0x4fc   :  { %v2435_v20 = vpop.eup %2434 }
 0x4fd   :  { %2205 = vmatmul.mubr.msk.bf16.vlgmr.msra.gmra.mrb[8].mxu0 %vm257_vm6, %v404_v19  ;;  %v535_v24 = vmul.f32 %v2435_v20, %v2419_v56 }
 0x4fe   :  { %v2437_v22 = vpop.eup %2436  ;;  %2215 = vmatpush3.bf16.msra.mxu0 %v538_v21  ;;  %2216 = vmatprep.mubr.msk.bf16.mxu0 %vm2512_vm3, %v2511_v9 }
 0x4ff   :  { %v533_v23 = vmul.f32 %v2437_v22, %v2421_v57  ;;  %2226 = vmatprep.subr.bf16.mxu0 %v2511_v9 }
 0x501   :  { %v536_v25 = vpack.c.bf16 %v535_v24, %v533_v23 }
 0x502   :  { %v2439_v26 = vpop.eup %2438 }
 0x503   :  { %v2441_v30 = vpop.eup %2440  ;;  %v665_v31 = vmul.f32 %v2439_v26, %v2425_v61 }
 0x504   :  { %v667_v32 = vmul.f32 %v2441_v30, %v2684_v59 }
 0x505   :  { %2217 = vmatmul.mubr.msk.bf16.vlgmr.msra.gmra.mrb[12].mxu0 %vm257_vm6, %v536_v25 }
 0x506   :  { %2227 = vmatpush3.bf16.msra.mxu0 %v670_v28  ;;  %2228 = vmatprep.mubr.msk.bf16.mxu0 %vm2512_vm3, %v2511_v9  ;;  %v668_v33 = vpack.c.bf16 %v667_v32, %v665_v31  ;;  %v2049_v28 = vld [vmem:[%s2983_s1 + $0x70] ss:$0 sm:$0xff] }
 0x507   :  { %2240 = vmatprep.subr.bf16.mxu0 %v2511_v9 }
 0x50d   :  { %2229 = vmatmul.mubr.msk.bf16.vlgmr.msra.gmra.mrb[16].mxu0 %vm257_vm6, %v668_v33 }
 0x50e   :  { %2244 = vmatprep.mubr.msk.bf16.mxu0 %vm2512_vm3, %v2511_v9  ;;  %2241 = vmatpush3.bf16.msra.mxu0 %v2394_v16 }
 0x50f   :  { %2242 = vmatprep.subr.bf16.mxu0 %v2511_v9 }
 0x512   :  { %2243 = vmatpush3.bf16.msra.mxu0 %v2395_v17  ;;  %v2527_v17 = vmov -1.0  }
 0x513   :  { %2260 = vmatprep.subr.bf16.mxu0 %v2511_v9 }
 0x59b   :  { %v321_v35 = vpop.f32.mrb[4].mxu0 }
 0x59c   :  { %328 = vst.msk [vmem:[#allocation2] sm:$0xff] %vm209_vm5, %v321_v35  ;;  %v2194_v36 = vpop.f32.mrb[5].mxu0  ;;  %v2396_v35 = vld [vmem:[%s2984_s2 + $0x30] sm:$0xff]  }
 0x59d   :  { %v324_v37 = vpop.f32.mrb[6].mxu0  ;;  %v2397_v36 = vld [vmem:[%s2984_s2 + $0x38] sm:$0xff]  }
 0x59e   :  { %329 = vst.msk [vmem:[#allocation2 + $0x8] sm:$0xff] %vm209_vm5, %v324_v37  ;;  %v2195_v38 = vpop.f32.mrb[7].mxu0  ;;  %v2398_v37 = vld [vmem:[%s2984_s2 + $0x40] sm:$0xff]  }
 0x59f   :  { %v2399_v38 = vld [vmem:[%s2984_s2 + $0x48] sm:$0xff]  }
 0x5d0   :  { %v445_v39 = vpop.f32.mrb[8].mxu0 }
 0x5d1   :  { %454 = vrot.lane.b32.xlu1 %v445_v39, %s2524_s27  ;;  %v2206_v40 = vpop.f32.mrb[9].mxu0 }
 0x5d2   :  { %v448_v41 = vpop.f32.mrb[10].mxu0 }
 0x5d3   :  { %456 = vrot.lane.b32.xlu0 %v448_v41, %s2524_s27  ;;  %v2207_v42 = vpop.f32.mrb[11].mxu0 }
 0x5d8   :  { %v577_v44 = vpop.f32.mrb[12].mxu0 }
 0x5d9   :  { %586 = vrot.lane.b32.xlu1 %v577_v44, %s2525_s4  ;;  %v2218_v46 = vpop.f32.mrb[13].mxu0 }
 0x5da   :  { %v580_v47 = vpop.f32.mrb[14].mxu0 }
 0x5db   :  { %588 = vrot.lane.b32.xlu0 %v580_v47, %s2525_s4  ;;  %v2219_v49 = vpop.f32.mrb[15].mxu0 }
 0x5e0   :  { %v709_v51 = vpop.f32.mrb[16].mxu0 }
 0x5e1   :  { %718 = vrot.lane.b32.xlu1 %v709_v51, %s2526_s5  ;;  %v2230_v52 = vpop.f32.mrb[17].mxu0 }
 0x5e2   :  { %v712_v53 = vpop.f32.mrb[18].mxu0 }
 0x5e3   :  { %720 = vrot.lane.b32.xlu0 %v712_v53, %s2526_s5  ;;  %v2231_v54 = vpop.f32.mrb[19].mxu0 }
 0x643   :  { %v455_v55 = vpop.permute.xlu1 %454 }
 0x644   :  { %461 = vst.msk [vmem:[#allocation2] sm:$0xff] %vm460_vm7, %v455_v55 }
 0x645   :  { %v457_v56 = vpop.permute.xlu0 %456 }
 0x646   :  { %462 = vst.msk [vmem:[#allocation2 + $0x8] sm:$0xff] %vm460_vm7, %v457_v56 }
 0x64b   :  { %v587_v57 = vpop.permute.xlu1 %586 }
 0x64c   :  { %593 = vst.msk [vmem:[#allocation2] sm:$0xff] %vm592_vm8, %v587_v57 }
 0x64d   :  { %v589_v58 = vpop.permute.xlu0 %588 }
 0x64e   :  { %594 = vst.msk [vmem:[#allocation2 + $0x8] sm:$0xff] %vm592_vm8, %v589_v58 }
 0x653   :  { %v719_v59 = vpop.permute.xlu1 %718 }
 0x654   :  { %725 = vst.msk [vmem:[#allocation2] sm:$0xff] %vm724_vm9, %v719_v59 }
 0x655   :  { %v721_v60 = vpop.permute.xlu0 %720 }
 0x656   :  { %726 = vst.msk [vmem:[#allocation2 + $0x8] sm:$0xff] %vm724_vm9, %v721_v60 }
 0x65b   :  { %v727_v61 = vld [vmem:[#allocation2] sm:$0xff] }
 0x65d   :  { %v728_v62 = vld [vmem:[#allocation2 + $0x8] sm:$0xff] }
 0x65e   :  { %v729_v63 = vpack.c.bf16 %v728_v62, %v727_v61 }
 0x660   :  { %2237 = vmatmul.mubr.msk.bf16.vlgmr.msra.gmra.mrb[20].mxu1 %vm159_vm4, %v729_v63 }
 0x661   :  { %2256 = vmatprep.mubr.msk.bf16.mxu1 %vm2512_vm3, %v2511_v9  ;;  %2249 = vmatpush3.bf16.msra.mxu1 %v2396_v35 }
 0x662   :  { %2250 = vmatprep.subr.bf16.mxu1 %v2511_v9 }
 0x665   :  { %2251 = vmatpush3.bf16.msra.mxu1 %v2397_v36 }
 0x666   :  { %2252 = vmatprep.subr.bf16.mxu1 %v2511_v9 }
 0x669   :  { %2253 = vmatpush3.bf16.msra.mxu1 %v2398_v37 }
 0x66a   :  { %2254 = vmatprep.subr.bf16.mxu1 %v2511_v9 }
 0x66d   :  { %2255 = vmatpush3.bf16.msra.mxu1 %v2399_v38 }
 0x66e   :  { %2274 = vmatprep.subr.bf16.mxu1 %v2511_v9 }
 0x733   :  { %v779_v0 = vpop.f32.mrb[20].mxu1 }
 0x734   :  { %v786_v1 = vadd.f32 %v779_v0, %v2605_v29  ;;  %v2238_v2 = vpop.f32.mrb[21].mxu1 }
 0x735   :  { %v782_v3 = vpop.f32.mrb[22].mxu1 }
 0x736   :  { %v787_v4 = vadd.f32 %v782_v3, %v2603_v27  ;;  %v2239_v5 = vpop.f32.mrb[23].mxu1  ;;  %v789_v6 = vsel %vm159_vm4, %v786_v1, 0.0 }
 0x737   :  { %790 = vadd.xlane.f32.xlu1 %v789_v6 }
 0x738   :  { %v792_v7 = vsel %vm159_vm4, %v787_v4, 0.0 }
 0x739   :  { %793 = vadd.xlane.f32.xlu0 %v792_v7 }
 0x7c4   :  { %v791_v8 = vpop.xlane.xlu1 %790 }
 0x7c5   :  { %v796_v10 = vmul.f32 0.03125, %v791_v8 }
 0x7c6   :  { %v794_v34 = vpop.xlane.xlu0 %793 }
 0x7c7   :  { %v798_v11 = vsub.f32 %v786_v1, %v796_v10  ;;  %v797_v12 = vmul.f32 0.03125, %v794_v34 }
 0x7c9   :  { %v799_v13 = vsub.f32 %v787_v4, %v797_v12  ;;  %v800_v14 = vmul.f32 %v798_v11, %v798_v11 }
 0x7cb   :  { %v802_v29 = vsel %vm159_vm4, %v800_v14, 0.0  ;;  %v801_v15 = vmul.f32 %v799_v13, %v799_v13 }
 0x7cc   :  { %803 = vadd.xlane.f32.xlu0 %v802_v29 }
 0x7cd   :  { %v805_v27 = vsel %vm159_vm4, %v801_v15, 0.0 }
 0x7ce   :  { %806 = vadd.xlane.f32.xlu1 %v805_v27 }
 0x859   :  { %v804_v18 = vpop.xlane.xlu0 %803 }
 0x85a   :  { %v808_v19 = vmul.f32 0.03125, %v804_v18 }
 0x85b   :  { %v807_v20 = vpop.xlane.xlu1 %806 }
 0x85c   :  { %v810_v21 = vadd.f32 1e-05, %v808_v19  ;;  %v809_v22 = vmul.f32 0.03125, %v807_v20 }
 0x85e   :  { %2442 = vrsqrt.f32 %v810_v21  ;;  %v811_v23 = vadd.f32 1e-05, %v809_v22 }
 0x860   :  { %2444 = vrsqrt.f32 %v811_v23 }
 0x868   :  { %v2443_v24 = vpop.eup %2442 }
 0x869   :  { %v814_v25 = vmul.f32 %v2443_v24, %v798_v11 }
 0x86a   :  { %v2445_v26 = vpop.eup %2444 }
 0x86b   :  { %v815_v30 = vmul.f32 %v2445_v26, %v799_v13  ;;  %v2754_v31 = vmul.f32 %v2049_v28, %v814_v25 }
 0x86d   :  { %v2756_v32 = vmul.f32 %v2049_v28, %v815_v30 }
 0x86f   :  { %v822_v33 = vpack.c.bf16 %v2756_v32, %v2754_v31 }
 0x871   :  { %2245 = vmatmul.mubr.msk.bf16.vlgmr.msra.gmra.mrb[20].mxu0 %vm159_vm4, %v822_v33 }
 0x872   :  { %2264 = vmatprep.mubr.msk.bf16.mxu0 %vm2512_vm3, %v2511_v9 }
 0x944   :  { %v872_v39 = vpop.f32.mrb[20].mxu0 }
 0x945   :  { %v881_v40 = vmul.f32 0.70710677, %v872_v39  ;;  %v2246_v41 = vpop.f32.mrb[21].mxu0  ;;  %v879_v25 = vmul.f32 0.5, %v872_v39 }
 0x946   :  { %v875_v42 = vpop.f32.mrb[22].mxu0 }
 0x947   :  { %v887_v43 = vand.u32 2147483647, %v881_v40  ;;  %v882_v44 = vmul.f32 0.70710677, %v875_v42  ;;  %v2247_v45 = vpop.f32.mrb[23].mxu0  ;;  %vm883_vm10 = vcmp.ge.f32.partialorder %v881_v40, 0.0 }
 0x948   :  { %v885_v18 = vsel %vm883_vm10, 1.0, %v2527_v17  ;;  %v880_v26 = vmul.f32 0.5, %v875_v42 }
 0x949   :  { %v889_v46 = vmul.f32 0.3275911, %v887_v43  ;;  %v888_v47 = vand.u32 2147483647, %v882_v44  ;;  %v913_v53 = vsub.f32 0.0, %v887_v43  ;;  %vm884_vm11 = vcmp.ge.f32.partialorder %v882_v44, 0.0 }
 0x94a   :  { %v886_v22 = vsel %vm884_vm11, 1.0, %v2527_v17 }
 0x94b   :  { %v891_v49 = vadd.f32 1.0, %v889_v46  ;;  %v890_v51 = vmul.f32 0.3275911, %v888_v47  ;;  %v914_v54 = vsub.f32 0.0, %v888_v47  ;;  %v915_v56 = vmul.f32 %v913_v53, %v887_v43 }
 0x94d   :  { %2446 = vrcp.f32 %v891_v49  ;;  %v892_v52 = vadd.f32 1.0, %v890_v51  ;;  %v916_v60 = vmul.f32 %v914_v54, %v888_v47  ;;  %v917_v61 = vmul.f32 1.442695, %v915_v56  ;;  %v2400_v54 = vld [vmem:[%s2984_s2 + $0x50] sm:$0xff]  }
 0x94e   :  { %2261 = vmatpush3.bf16.msra.mxu0 %v2400_v54 }
 0x94f   :  { %2448 = vrcp.f32 %v892_v52  ;;  %v919_v2 = vmul.f32 1.442695, %v916_v60  ;;  %2262 = vmatprep.subr.bf16.mxu0 %v2511_v9 }
 0x950   :  { %2450 = vpow2.f32 %v917_v61 }
 0x951   :  { %2452 = vpow2.f32 %v919_v2 }
 0x957   :  { %v2447_v55 = vpop.eup %2446 }
 0x958   :  { %v895_v57 = vmul.f32 1.0614054, %v2447_v55 }
 0x959   :  { %v2449_v58 = vpop.eup %2448 }
 0x95a   :  { %v897_v59 = vadd.f32 -1.4531521, %v895_v57  ;;  %v896_v62 = vmul.f32 1.0614054, %v2449_v58  ;;  %v2451_v13 = vpop.eup %2450 }
 0x95b   :  { %v2453_v27 = vpop.eup %2452 }
 0x95c   :  { %v899_v63 = vmul.f32 %v2447_v55, %v897_v59  ;;  %v898_v0 = vadd.f32 -1.4531521, %v896_v62 }
 0x95e   :  { %v901_v1 = vadd.f32 1.4214138, %v899_v63  ;;  %v900_v3 = vmul.f32 %v2449_v58, %v898_v0 }
 0x960   :  { %v903_v4 = vmul.f32 %v2447_v55, %v901_v1  ;;  %v902_v5 = vadd.f32 1.4214138, %v900_v3  ;;  %v2058_v1 = vld [vmem:[%s2983_s1 + $0x80] ss:$0 sm:$0xff] }
 0x962   :  { %v905_v6 = vadd.f32 -0.28449672, %v903_v4  ;;  %v904_v7 = vmul.f32 %v2449_v58, %v902_v5 }
 0x964   :  { %v907_v8 = vmul.f32 %v2447_v55, %v905_v6  ;;  %v906_v10 = vadd.f32 -0.28449672, %v904_v7 }
 0x966   :  { %v909_v34 = vadd.f32 0.2548296, %v907_v8  ;;  %v908_v11 = vmul.f32 %v2449_v58, %v906_v10 }
 0x968   :  { %v911_v12 = vmul.f32 %v2447_v55, %v909_v34  ;;  %v910_v14 = vadd.f32 0.2548296, %v908_v11  ;;  %v2401_v55 = vld [vmem:[%s2984_s2 + $0x58] sm:$0xff]  }
 0x969   :  { %2263 = vmatpush3.bf16.msra.mxu0 %v2401_v55 }
 0x96a   :  { %v921_v29 = vmul.f32 %v2451_v13, %v911_v12  ;;  %v912_v15 = vmul.f32 %v2449_v58, %v910_v14  ;;  %2268 = vmatprep.subr.bf16.mxu0 %v2511_v9 }
 0x96c   :  { %v923_v16 = vsub.f32 1.0, %v921_v29  ;;  %v922_v19 = vmul.f32 %v2453_v27, %v912_v15 }
 0x96e   :  { %v925_v20 = vmul.f32 %v923_v16, %v885_v18  ;;  %v924_v21 = vsub.f32 1.0, %v922_v19 }
 0x970   :  { %v927_v23 = vadd.f32 1.0, %v925_v20  ;;  %v926_v24 = vmul.f32 %v924_v21, %v886_v22 }
 0x972   :  { %v928_v28 = vadd.f32 1.0, %v926_v24  ;;  %v929_v30 = vmul.f32 %v927_v23, %v879_v25 }
 0x974   :  { %v930_v33 = vmul.f32 %v928_v28, %v880_v26 }
 0x976   :  { %v931_v35 = vpack.c.bf16 %v930_v33, %v929_v30 }
 0x978   :  { %2257 = vmatmul.mubr.msk.bf16.vlgmr.msra.gmra.mrb[24].mxu1 %vm42_vm0, %v931_v35 }
 0x979   :  { %2276 = vmatprep.mubr.msk.bf16.mxu1 %vm2512_vm3, %v2511_v9 }
 0xa4b   :  { %v993_v36 = vpop.f32.mrb[24].mxu1 }
 0xa4c   :  { %v1000_v37 = vadd.f32 %v993_v36, %v2754_v31  ;;  %v2258_v38 = vpop.f32.mrb[25].mxu1 }
 0xa4d   :  { %v996_v40 = vpop.f32.mrb[26].mxu1 }
 0xa4e   :  { %v1001_v41 = vadd.f32 %v996_v40, %v2756_v32  ;;  %v2259_v43 = vpop.f32.mrb[27].mxu1  ;;  %v1003_v39 = vsel %vm159_vm4, %v1000_v37, 0.0 }
 0xa4f   :  { %1004 = vadd.xlane.f32.xlu0 %v1003_v39 }
 0xa50   :  { %v1006_v42 = vsel %vm159_vm4, %v1001_v41, 0.0 }
 0xa51   :  { %1007 = vadd.xlane.f32.xlu1 %v1006_v42 }
 0xadc   :  { %v1005_v44 = vpop.xlane.xlu0 %1004 }
 0xadd   :  { %v1009_v45 = vmul.f32 0.03125, %v1005_v44 }
 0xade   :  { %v1008_v46 = vpop.xlane.xlu1 %1007 }
 0xadf   :  { %v1011_v47 = vsub.f32 %v1000_v37, %v1009_v45  ;;  %v1010_v49 = vmul.f32 0.03125, %v1008_v46 }
 0xae1   :  { %v1012_v51 = vsub.f32 %v1001_v41, %v1010_v49  ;;  %v1013_v52 = vmul.f32 %v1011_v47, %v1011_v47 }
 0xae3   :  { %v1015_v31 = vsel %vm159_vm4, %v1013_v52, 0.0  ;;  %v1014_v53 = vmul.f32 %v1012_v51, %v1012_v51 }
 0xae4   :  { %1016 = vadd.xlane.f32.xlu0 %v1015_v31 }
 0xae5   :  { %v1018_v32 = vsel %vm159_vm4, %v1014_v53, 0.0 }
 0xae6   :  { %1019 = vadd.xlane.f32.xlu1 %v1018_v32 }
 0xb71   :  { %v1017_v56 = vpop.xlane.xlu0 %1016 }
 0xb72   :  { %v1021_v57 = vmul.f32 0.03125, %v1017_v56 }
 0xb73   :  { %v1020_v58 = vpop.xlane.xlu1 %1019 }
 0xb74   :  { %v1023_v59 = vadd.f32 1e-05, %v1021_v57  ;;  %v1022_v60 = vmul.f32 0.03125, %v1020_v58 }
 0xb76   :  { %2454 = vrsqrt.f32 %v1023_v59  ;;  %v1024_v61 = vadd.f32 1e-05, %v1022_v60 }
 0xb78   :  { %2456 = vrsqrt.f32 %v1024_v61 }
 0xb80   :  { %v2455_v62 = vpop.eup %2454 }
 0xb81   :  { %v1027_v63 = vmul.f32 %v2455_v62, %v1011_v47 }
 0xb82   :  { %v2457_v0 = vpop.eup %2456 }
 0xb83   :  { %v1028_v2 = vmul.f32 %v2457_v0, %v1012_v51  ;;  %v2801_v3 = vmul.f32 %v2058_v1, %v1027_v63 }
 0xb85   :  { %v2803_v4 = vmul.f32 %v2058_v1, %v1028_v2 }
 0xb87   :  { %v1055_v5 = vpack.c.bf16 %v2803_v4, %v2801_v3 }
 0xb89   :  { %2265 = vmatmul.mubr.msk.bf16.vlgmr.msra.gmra.mrb[24].mxu0 %vm159_vm4, %v1055_v5 }
 0xb8a   :  { %2270 = vmatprep.mubr.msk.bf16.mxu0 %vm2512_vm3, %v2511_v9 }
 0xc5c   :  { %v1105_v6 = vpop.f32.mrb[24].mxu0 }
 0xc5d   :  { %v2266_v7 = vpop.f32.mrb[25].mxu0 }
 0xc5e   :  { %v1108_v8 = vpop.f32.mrb[26].mxu0 }
 0xc5f   :  { %v2810_v10 = vpack.c.bf16 %v1108_v8, %v1105_v6  ;;  %v2267_v34 = vpop.f32.mrb[27].mxu0 }
 0xc61   :  { %1239 = vrot.lane.b32.xlu1 %v2810_v10, %s2515_s14  ;;  %1115 = vrot.lane.b32.xlu0 %v2810_v10, %s2513_s12  ;;  %v1113_v11 = vmul.bf16 1052065461, %v2810_v10 }
 0xc65   :  { %1370 = vrot.lane.b32.xlu0 %v2810_v10, %s2517_s16  ;;  %1237 = vrot.lane.b32.xlu1 %v1113_v11, %s2514_s13 }
 0xc69   :  { %1501 = vrot.lane.b32.xlu0 %v2810_v10, %s2519_s18  ;;  %1368 = vrot.lane.b32.xlu1 %v1113_v11, %s2516_s15 }
 0xc6d   :  { %1499 = vrot.lane.b32.xlu1 %v1113_v11, %s2518_s17 }
 0xcd3   :  { %v1116_v12 = vpop.permute.xlu0 %1115  ;;  %v1240_v14 = vpop.permute.xlu1 %1239 }
 0xcd4   :  { %v1121_v13 = vsel %vm209_vm5, %v1116_v12, 0  ;;  %v1245_v29 = vsel %vm209_vm5, %v1240_v14, 0 }
 0xcd5   :  { %2269 = vmatpush3.bf16.xpose.msra.mxu0 %v1121_v13 }
 0xcd6   :  { %2280 = vmatprep.subr.bf16.mxu0 %v2511_v9 }
 0xcd7   :  { %v1371_v15 = vpop.permute.xlu0 %1370  ;;  %v1238_v27 = vpop.permute.xlu1 %1237 }
 0xcd8   :  { %v1376_v16 = vsel %vm209_vm5, %v1371_v15, 0 }
 0xcdb   :  { %v1502_v18 = vpop.permute.xlu0 %1501  ;;  %v1369_v19 = vpop.permute.xlu1 %1368 }
 0xcdc   :  { %2271 = vmatmul.mubr.msk.bf16.vlgmr.msra.gmra.mrb[28].mxu0 %vm209_vm5, %v1113_v11  ;;  %v1507_v20 = vsel %vm209_vm5, %v1502_v18, 0 }
 0xcdd   :  { %2281 = vmatpush3.bf16.xpose.msra.mxu0 %v1245_v29  ;;  %2282 = vmatprep.mubr.msk.bf16.mxu0 %vm2512_vm3, %v2511_v9 }
 0xcde   :  { %2292 = vmatprep.subr.bf16.mxu0 %v2511_v9 }
 0xcdf   :  { %v1500_v21 = vpop.permute.xlu1 %1499 }
 0xce4   :  { %2283 = vmatmul.mubr.msk.bf16.vlgmr.msra.gmra.mrb[32].mxu0 %vm209_vm5, %v1238_v27 }
 0xce5   :  { %2293 = vmatpush3.bf16.xpose.msra.mxu0 %v1376_v16  ;;  %2294 = vmatprep.mubr.msk.bf16.mxu0 %vm2512_vm3, %v2511_v9 }
 0xce6   :  { %2304 = vmatprep.subr.bf16.mxu0 %v2511_v9 }
 0xcec   :  { %2295 = vmatmul.mubr.msk.bf16.vlgmr.msra.gmra.mrb[36].mxu0 %vm209_vm5, %v1369_v19 }
 0xced   :  { %2305 = vmatpush3.bf16.xpose.msra.mxu0 %v1507_v20  ;;  %2306 = vmatprep.mubr.msk.bf16.mxu0 %vm2512_vm3, %v2511_v9 }
 0xcee   :  { %2316 = vmatprep.subr.bf16.mxu0 %v2511_v9 }
 0xcf4   :  { %2307 = vmatmul.mubr.msk.bf16.vlgmr.msra.gmra.mrb[40].mxu0 %vm209_vm5, %v1500_v21 }
 0xcf5   :  { %2320 = vmatprep.mubr.msk.bf16.mxu0 %vm2512_vm3, %v2511_v9 }
 0xdaf   :  { %v1157_v22 = vpop.f32.mrb[28].mxu0 }
 0xdb0   :  { %v1158_v23 = vadd.f32 %v1157_v22, %v2649_v48  ;;  %v2272_v24 = vpop.f32.mrb[29].mxu0 }
 0xdb1   :  { %v1160_v25 = vpop.f32.mrb[30].mxu0 }
 0xdb2   :  { %v1161_v26 = vadd.f32 %v1160_v25, %v2654_v50  ;;  %v2273_v28 = vpop.f32.mrb[31].mxu0  ;;  %v1164_v30 = vsel %vm257_vm6, %v1158_v23, -inf }
 0xdb3   :  { %1165 = vmax.xlane.f32.xlu0 %v1164_v30 }
 0xdb4   :  { %v1167_v33 = vsel %vm257_vm6, %v1161_v26, -inf }
 0xdb5   :  { %1168 = vmax.xlane.f32.xlu1 %v1167_v33 }
 0xdb7   :  { %v1281_v35 = vpop.f32.mrb[32].mxu0 }
 0xdb8   :  { %v1282_v36 = vadd.f32 %v1281_v35, %v2649_v48  ;;  %v2284_v37 = vpop.f32.mrb[33].mxu0 }
 0xdb9   :  { %v1284_v38 = vpop.f32.mrb[34].mxu0 }
 0xdba   :  { %v1285_v40 = vadd.f32 %v1284_v38, %v2654_v50  ;;  %v2285_v41 = vpop.f32.mrb[35].mxu0  ;;  %v1288_v43 = vsel %vm257_vm6, %v1282_v36, -inf }
 0xdbb   :  { %1289 = vmax.xlane.f32.xlu0 %v1288_v43 }
 0xdbc   :  { %v1291_v39 = vsel %vm257_vm6, %v1285_v40, -inf }
 0xdbf   :  { %1292 = vmax.xlane.f32.xlu0 %v1291_v39  ;;  %v1412_v42 = vpop.f32.mrb[36].mxu0 }
 0xdc0   :  { %v1413_v44 = vadd.f32 %v1412_v42, %v2649_v48  ;;  %v2296_v45 = vpop.f32.mrb[37].mxu0 }
 0xdc1   :  { %v1415_v46 = vpop.f32.mrb[38].mxu0 }
 0xdc2   :  { %v1416_v47 = vadd.f32 %v1415_v46, %v2654_v50  ;;  %v2297_v49 = vpop.f32.mrb[39].mxu0  ;;  %v1419_v51 = vsel %vm257_vm6, %v1413_v44, -inf }
 0xdc3   :  { %1420 = vmax.xlane.f32.xlu1 %v1419_v51 }
 0xdc4   :  { %v1422_v52 = vsel %vm257_vm6, %v1416_v47, -inf }
 0xdc5   :  { %1423 = vmax.xlane.f32.xlu0 %v1422_v52 }
 0xdc7   :  { %v1543_v31 = vpop.f32.mrb[40].mxu0 }
 0xdc8   :  { %v1544_v53 = vadd.f32 %v1543_v31, %v2649_v48  ;;  %v2308_v32 = vpop.f32.mrb[41].mxu0 }
 0xdc9   :  { %v1546_v54 = vpop.f32.mrb[42].mxu0 }
 0xdca   :  { %v1547_v55 = vadd.f32 %v1546_v54, %v2654_v50  ;;  %v2309_v56 = vpop.f32.mrb[43].mxu0  ;;  %v1550_v57 = vsel %vm257_vm6, %v1544_v53, -inf }
 0xdcb   :  { %1551 = vmax.xlane.f32.xlu1 %v1550_v57 }
 0xdcc   :  { %v1553_v58 = vsel %vm257_vm6, %v1547_v55, -inf }
 0xdcd   :  { %1554 = vmax.xlane.f32.xlu0 %v1553_v58 }
 0xddc   :  { %1187 = vrot.lane.b32.xlu1 %v2810_v10, %s2521_s24 }
 0xe40   :  { %v1166_v59 = vpop.xlane.xlu0 %1165 }
 0xe41   :  { %v1170_v60 = vsub.f32 %v1158_v23, %v1166_v59 }
 0xe42   :  { %v1169_v61 = vpop.xlane.xlu1 %1168 }
 0xe43   :  { %v1172_v62 = vmul.f32 1.442695, %v1170_v60  ;;  %v1171_v63 = vsub.f32 %v1161_v26, %v1169_v61 }
 0xe45   :  { %2458 = vpow2.f32 %v1172_v62  ;;  %v1174_v48 = vmul.f32 1.442695, %v1171_v63 }
 0xe47   :  { %2460 = vpow2.f32 %v1174_v48 }
 0xe48   :  { %v1290_v0 = vpop.xlane.xlu0 %1289 }
 0xe49   :  { %v1294_v50 = vsub.f32 %v1282_v36, %v1290_v0 }
 0xe4b   :  { %v1296_v1 = vmul.f32 1.442695, %v1294_v50 }
 0xe4c   :  { %v1293_v2 = vpop.xlane.xlu0 %1292 }
 0xe4d   :  { %2462 = vpow2.f32 %v1296_v1  ;;  %v1295_v5 = vsub.f32 %v1285_v40, %v1293_v2 }
 0xe4f   :  { %v2459_v6 = vpop.eup %2458  ;;  %v1298_v7 = vmul.f32 1.442695, %v1295_v5 }
 0xe50   :  { %v1421_v8 = vpop.xlane.xlu1 %1420  ;;  %v1176_v34 = vsel %vm257_vm6, %v2459_v6, 0.0 }
 0xe51   :  { %v2461_v11 = vpop.eup %2460  ;;  %2464 = vpow2.f32 %v1298_v7  ;;  %v1425_v12 = vsub.f32 %v1413_v44, %v1421_v8  ;;  %1177 = vadd.xlane.f32.xlu1 %v1176_v34 }
 0xe52   :  { %v1424_v13 = vpop.xlane.xlu0 %1423  ;;  %v1179_v14 = vsel %vm257_vm6, %v2461_v11, 0.0 }
 0xe53   :  { %v1427_v29 = vmul.f32 1.442695, %v1425_v12  ;;  %v1426_v15 = vsub.f32 %v1416_v47, %v1424_v13  ;;  %1180 = vadd.xlane.f32.xlu0 %v1179_v14 }
 0xe55   :  { %2466 = vpow2.f32 %v1427_v29  ;;  %v1429_v27 = vmul.f32 1.442695, %v1426_v15  ;;  %v2402_v15 = vld [vmem:[%s2984_s2 + $0x60] sm:$0xff]  }
 0xe56   :  { %2317 = vmatpush3.bf16.msra.mxu0 %v2402_v15 }
 0xe57   :  { %v2463_v16 = vpop.eup %2462  ;;  %2468 = vpow2.f32 %v1429_v27  ;;  %2318 = vmatprep.subr.bf16.mxu0 %v2511_v9 }
 0xe58   :  { %v1552_v18 = vpop.xlane.xlu1 %1551  ;;  %v1300_v19 = vsel %vm257_vm6, %v2463_v16, 0.0 }
 0xe59   :  { %v1556_v20 = vsub.f32 %v1544_v53, %v1552_v18  ;;  %1301 = vadd.xlane.f32.xlu1 %v1300_v19 }
 0xe5a   :  { %v1555_v21 = vpop.xlane.xlu0 %1554 }
 0xe5b   :  { %v2465_v22 = vpop.eup %2464  ;;  %v1558_v23 = vmul.f32 1.442695, %v1556_v20  ;;  %v1557_v24 = vsub.f32 %v1547_v55, %v1555_v21 }
 0xe5c   :  { %v1188_v25 = vpop.permute.xlu1 %1187  ;;  %v1303_v26 = vsel %vm257_vm6, %v2465_v22, 0.0 }
 0xe5d   :  { %2470 = vpow2.f32 %v1558_v23  ;;  %v1560_v28 = vmul.f32 1.442695, %v1557_v24  ;;  %2275 = vmatpush3.bf16.msra.mxu1 %v1188_v25  ;;  %1304 = vadd.xlane.f32.xlu0 %v1303_v26 }
 0xe5e   :  { %2286 = vmatprep.subr.bf16.mxu1 %v2511_v9 }
 0xe5f   :  { %v2467_v30 = vpop.eup %2466  ;;  %2472 = vpow2.f32 %v1560_v28 }
 0xe60   :  { %v1431_v33 = vsel %vm257_vm6, %v2467_v30, 0.0 }
 0xe61   :  { %v2469_v35 = vpop.eup %2468  ;;  %1432 = vadd.xlane.f32.xlu1 %v1431_v33 }
 0xe62   :  { %v1434_v36 = vsel %vm257_vm6, %v2469_v35, 0.0 }
 0xe63   :  { %1435 = vadd.xlane.f32.xlu0 %v1434_v36 }
 0xe67   :  { %v2471_v37 = vpop.eup %2470 }
 0xe68   :  { %v1562_v38 = vsel %vm257_vm6, %v2471_v37, 0.0 }
 0xe69   :  { %v2473_v40 = vpop.eup %2472  ;;  %1563 = vadd.xlane.f32.xlu1 %v1562_v38 }
 0xe6a   :  { %v1565_v41 = vsel %vm257_vm6, %v2473_v40, 0.0 }
 0xe6b   :  { %1566 = vadd.xlane.f32.xlu0 %v1565_v41 }
 0xe7a   :  { %1442 = vrot.lane.b32.xlu1 %v2810_v10, %s2522_s25 }
 0xe7e   :  { %1573 = vrot.lane.b32.xlu1 %v2810_v10, %s2523_s26 }
 0xe81   :  { %1311 = vrot.lane.b32.xlu0 %v2810_v10, %s2520_s23 }
 0xede   :  { %v1178_v43 = vpop.xlane.xlu1 %1177 }
 0xedf   :  { %2474 = vrcp.f32 %v1178_v43 }
 0xee0   :  { %v1181_v39 = vpop.xlane.xlu0 %1180 }
 0xee1   :  { %2476 = vrcp.f32 %v1181_v39 }
 0xee6   :  { %v1302_v49 = vpop.xlane.xlu1 %1301 }
 0xee9   :  { %v2475_v42 = vpop.eup %2474 }
 0xeea   :  { %v1305_v44 = vpop.xlane.xlu0 %1304  ;;  %v1183_v46 = vmul.f32 %v2475_v42, %v2459_v6 }
 0xeeb   :  { %v2477_v45 = vpop.eup %2476  ;;  %2478 = vrcp.f32 %v1305_v44 }
 0xeec   :  { %v1185_v47 = vmul.f32 %v2477_v45, %v2461_v11  ;;  %2480 = vrcp.f32 %v1302_v49 }
 0xeee   :  { %v1186_v51 = vpack.c.bf16 %v1185_v47, %v1183_v46  ;;  %v1433_v10 = vpop.xlane.xlu1 %1432 }
 0xef0   :  { %2277 = vmatmul.mubr.msk.bf16.vlgmr.msra.gmra.mrb[28].mxu1 %vm257_vm6, %v1186_v51  ;;  %v1436_v52 = vpop.xlane.xlu0 %1435 }
 0xef1   :  { %2288 = vmatprep.mubr.msk.bf16.mxu1 %vm2512_vm3, %v2511_v9  ;;  %2482 = vrcp.f32 %v1436_v52 }
 0xef2   :  { %2484 = vrcp.f32 %v1433_v10 }
 0xef5   :  { %v2479_v31 = vpop.eup %2478 }
 0xef6   :  { %v2481_v32 = vpop.eup %2480  ;;  %v1309_v54 = vmul.f32 %v2479_v31, %v2465_v22  ;;  %v1564_v55 = vpop.xlane.xlu1 %1563 }
 0xef7   :  { %v1307_v56 = vmul.f32 %v2481_v32, %v2463_v16  ;;  %v2403_v16 = vld [vmem:[%s2984_s2 + $0x68] sm:$0xff]  }
 0xef8   :  { %v1567_v53 = vpop.xlane.xlu0 %1566  ;;  %2319 = vmatpush3.bf16.msra.mxu0 %v2403_v16 }
 0xef9   :  { %2486 = vrcp.f32 %v1567_v53  ;;  %v1310_v58 = vpack.c.bf16 %v1309_v54, %v1307_v56  ;;  %2332 = vmatprep.subr.bf16.mxu0 %v2511_v9  ;;  %v2404_v54 = vld [vmem:[%s2984_s2 + $0x70] sm:$0xff]  }
 0xefa   :  { %2488 = vrcp.f32 %v1564_v55  ;;  %v1443_v60 = vpop.permute.xlu1 %1442  ;;  %v2405_v55 = vld [vmem:[%s2984_s2 + $0x78] sm:$0xff]  }
 0xefb   :  { %v2483_v59 = vpop.eup %2482 }
 0xefc   :  { %v1312_v57 = vpop.permute.xlu0 %1311  ;;  %v2485_v61 = vpop.eup %2484  ;;  %v1440_v62 = vmul.f32 %v2483_v59, %v2469_v35 }
 0xefd   :  { %2287 = vmatpush3.bf16.msra.mxu1 %v1312_v57  ;;  %v1438_v63 = vmul.f32 %v2485_v61, %v2467_v30 }
 0xefe   :  { %2298 = vmatprep.subr.bf16.mxu1 %v2511_v9  ;;  %v1574_v50 = vpop.permute.xlu1 %1573 }
 0xeff   :  { %v1441_v48 = vpack.c.bf16 %v1440_v62, %v1438_v63 }
 0xf00   :  { %2289 = vmatmul.mubr.msk.bf16.vlgmr.msra.gmra.mrb[32].mxu1 %vm257_vm6, %v1310_v58 }
 0xf01   :  { %2299 = vmatpush3.bf16.msra.mxu1 %v1443_v60  ;;  %2300 = vmatprep.mubr.msk.bf16.mxu1 %vm2512_vm3, %v2511_v9 }
 0xf02   :  { %2310 = vmatprep.subr.bf16.mxu1 %v2511_v9 }
 0xf03   :  { %v2487_v0 = vpop.eup %2486 }
 0xf04   :  { %v2489_v1 = vpop.eup %2488  ;;  %v1571_v2 = vmul.f32 %v2487_v0, %v2473_v40  ;;  %v2073_v0 = vld [vmem:[%s2983_s1 + $0x78] ss:$0 sm:$0xff] }
 0xf05   :  { %v1569_v5 = vmul.f32 %v2489_v1, %v2471_v37 }
 0xf07   :  { %v1572_v6 = vpack.c.bf16 %v1571_v2, %v1569_v5 }
 0xf08   :  { %2301 = vmatmul.mubr.msk.bf16.vlgmr.msra.gmra.mrb[36].mxu1 %vm257_vm6, %v1441_v48 }
 0xf09   :  { %2311 = vmatpush3.bf16.msra.mxu1 %v1574_v50  ;;  %2312 = vmatprep.mubr.msk.bf16.mxu1 %vm2512_vm3, %v2511_v9 }
 0xf0a   :  { %2324 = vmatprep.subr.bf16.mxu1 %v2511_v9 }
 0xf10   :  { %2313 = vmatmul.mubr.msk.bf16.vlgmr.msra.gmra.mrb[40].mxu1 %vm257_vm6, %v1572_v6  ;;  %v2406_v6 = vld [vmem:[%s2984_s2 + $0x80] sm:$0xff]  }
 0xf11   :  { %2328 = vmatprep.mubr.msk.bf16.mxu1 %vm2512_vm3, %v2511_v9  ;;  %2325 = vmatpush3.bf16.msra.mxu1 %v2404_v54 }
 0xf12   :  { %2326 = vmatprep.subr.bf16.mxu1 %v2511_v9 }
 0xf15   :  { %2327 = vmatpush3.bf16.msra.mxu1 %v2405_v55 }
 0xfc3   :  { %v1227_v7 = vpop.f32.mrb[28].mxu1 }
 0xfc4   :  { %1234 = vst.msk [vmem:[#allocation2] sm:$0xff] %vm209_vm5, %v1227_v7  ;;  %v2278_v8 = vpop.f32.mrb[29].mxu1  ;;  %v2407_v7 = vld [vmem:[%s2984_s2 + $0x88] sm:$0xff]  }
 0xfc5   :  { %v1230_v34 = vpop.f32.mrb[30].mxu1  ;;  %v2408_v8 = vld [vmem:[%s2984_s2 + $0x90] sm:$0xff]  }
 0xfc6   :  { %1235 = vst.msk [vmem:[#allocation2 + $0x8] sm:$0xff] %vm209_vm5, %v1230_v34  ;;  %v2279_v11 = vpop.f32.mrb[31].mxu1  ;;  %v2409_v34 = vld [vmem:[%s2984_s2 + $0x98] sm:$0xff]  }
 0xfd3   :  { %v1351_v12 = vpop.f32.mrb[32].mxu1 }
 0xfd4   :  { %1360 = vrot.lane.b32.xlu0 %v1351_v12, %s2524_s27  ;;  %v2290_v13 = vpop.f32.mrb[33].mxu1 }
 0xfd5   :  { %v1354_v14 = vpop.f32.mrb[34].mxu1 }
 0xfd6   :  { %1362 = vrot.lane.b32.xlu1 %v1354_v14, %s2524_s27  ;;  %v2291_v29 = vpop.f32.mrb[35].mxu1 }
 0xfdb   :  { %v1482_v27 = vpop.f32.mrb[36].mxu1 }
 0xfdc   :  { %1491 = vrot.lane.b32.xlu0 %v1482_v27, %s2525_s4  ;;  %v2302_v18 = vpop.f32.mrb[37].mxu1 }
 0xfdd   :  { %v1485_v19 = vpop.f32.mrb[38].mxu1 }
 0xfde   :  { %1493 = vrot.lane.b32.xlu1 %v1485_v19, %s2525_s4  ;;  %v2303_v20 = vpop.f32.mrb[39].mxu1 }
 0xfe3   :  { %v1613_v21 = vpop.f32.mrb[40].mxu1 }
 0xfe4   :  { %1622 = vrot.lane.b32.xlu0 %v1613_v21, %s2526_s5  ;;  %v2314_v22 = vpop.f32.mrb[41].mxu1 }
 0xfe5   :  { %v1616_v23 = vpop.f32.mrb[42].mxu1 }
 0xfe6   :  { %1624 = vrot.lane.b32.xlu1 %v1616_v23, %s2526_s5  ;;  %v2315_v24 = vpop.f32.mrb[43].mxu1 }
0x1046   :  { %v1361_v25 = vpop.permute.xlu0 %1360 }
0x1047   :  { %1366 = vst.msk [vmem:[#allocation2] sm:$0xff] %vm460_vm7, %v1361_v25 }
0x1048   :  { %v1363_v26 = vpop.permute.xlu1 %1362 }
0x1049   :  { %1367 = vst.msk [vmem:[#allocation2 + $0x8] sm:$0xff] %vm460_vm7, %v1363_v26 }
0x104e   :  { %v1492_v28 = vpop.permute.xlu0 %1491 }
0x104f   :  { %1497 = vst.msk [vmem:[#allocation2] sm:$0xff] %vm592_vm8, %v1492_v28 }
0x1050   :  { %v1494_v30 = vpop.permute.xlu1 %1493 }
0x1051   :  { %1498 = vst.msk [vmem:[#allocation2 + $0x8] sm:$0xff] %vm592_vm8, %v1494_v30 }
0x1056   :  { %v1623_v33 = vpop.permute.xlu0 %1622 }
0x1057   :  { %1628 = vst.msk [vmem:[#allocation2] sm:$0xff] %vm724_vm9, %v1623_v33 }
0x1058   :  { %v1625_v35 = vpop.permute.xlu1 %1624 }
0x1059   :  { %1629 = vst.msk [vmem:[#allocation2 + $0x8] sm:$0xff] %vm724_vm9, %v1625_v35 }
0x105e   :  { %v1630_v36 = vld [vmem:[#allocation2] sm:$0xff] }
0x1060   :  { %v1631_v37 = vld [vmem:[#allocation2 + $0x8] sm:$0xff] }
0x1061   :  { %v1632_v38 = vpack.c.bf16 %v1631_v37, %v1630_v36 }
0x1063   :  { %2321 = vmatmul.mubr.msk.bf16.vlgmr.msra.gmra.mrb[44].mxu0 %vm159_vm4, %v1632_v38 }
0x1064   :  { %2340 = vmatprep.mubr.msk.bf16.mxu0 %vm2512_vm3, %v2511_v9  ;;  %2333 = vmatpush3.bf16.msra.mxu0 %v2406_v6 }
0x1065   :  { %2334 = vmatprep.subr.bf16.mxu0 %v2511_v9 }
0x1068   :  { %2335 = vmatpush3.bf16.msra.mxu0 %v2407_v7 }
0x1069   :  { %2336 = vmatprep.subr.bf16.mxu0 %v2511_v9 }
0x106c   :  { %2337 = vmatpush3.bf16.msra.mxu0 %v2408_v8 }
0x106d   :  { %2338 = vmatprep.subr.bf16.mxu0 %v2511_v9 }
0x1070   :  { %2339 = vmatpush3.bf16.msra.mxu0 %v2409_v34 }
0x1136   :  { %v1682_v40 = vpop.f32.mrb[44].mxu0 }
0x1137   :  { %v1689_v41 = vadd.f32 %v1682_v40, %v2801_v3  ;;  %v2322_v43 = vpop.f32.mrb[45].mxu0 }
0x1138   :  { %v1685_v39 = vpop.f32.mrb[46].mxu0 }
0x1139   :  { %v1690_v42 = vadd.f32 %v1685_v39, %v2803_v4  ;;  %v2323_v44 = vpop.f32.mrb[47].mxu0  ;;  %v1692_v45 = vsel %vm159_vm4, %v1689_v41, 0.0 }
0x113a   :  { %1693 = vadd.xlane.f32.xlu0 %v1692_v45 }
0x113b   :  { %v1695_v46 = vsel %vm159_vm4, %v1690_v42, 0.0 }
0x113c   :  { %1696 = vadd.xlane.f32.xlu1 %v1695_v46 }
0x11c7   :  { %v1694_v47 = vpop.xlane.xlu0 %1693 }
0x11c8   :  { %v1698_v49 = vmul.f32 0.03125, %v1694_v47 }
0x11c9   :  { %v1697_v51 = vpop.xlane.xlu1 %1696 }
0x11ca   :  { %v1700_v52 = vsub.f32 %v1689_v41, %v1698_v49  ;;  %v1699_v10 = vmul.f32 0.03125, %v1697_v51 }
0x11cc   :  { %v1701_v31 = vsub.f32 %v1690_v42, %v1699_v10  ;;  %v1702_v53 = vmul.f32 %v1700_v52, %v1700_v52 }
0x11ce   :  { %v1704_v3 = vsel %vm159_vm4, %v1702_v53, 0.0  ;;  %v1703_v32 = vmul.f32 %v1701_v31, %v1701_v31 }
0x11cf   :  { %1705 = vadd.xlane.f32.xlu0 %v1704_v3 }
0x11d0   :  { %v1707_v4 = vsel %vm159_vm4, %v1703_v32, 0.0 }
0x11d3   :  { %1708 = vadd.xlane.f32.xlu0 %v1707_v4 }
0x125c   :  { %v1706_v56 = vpop.xlane.xlu0 %1705 }
0x125d   :  { %v1710_v57 = vmul.f32 0.03125, %v1706_v56 }
0x125f   :  { %v1712_v58 = vadd.f32 1e-05, %v1710_v57 }
0x1260   :  { %v1709_v59 = vpop.xlane.xlu0 %1708 }
0x1261   :  { %2490 = vrsqrt.f32 %v1712_v58  ;;  %v1711_v60 = vmul.f32 0.03125, %v1709_v59 }
0x1263   :  { %v1713_v61 = vadd.f32 1e-05, %v1711_v60 }
0x1265   :  { %2492 = vrsqrt.f32 %v1713_v61 }
0x126b   :  { %v2491_v62 = vpop.eup %2490 }
0x126c   :  { %v1716_v63 = vmul.f32 %v2491_v62, %v1700_v52 }
0x126e   :  { %v2933_v1 = vmul.f32 %v2073_v0, %v1716_v63 }
0x126f   :  { %v2493_v48 = vpop.eup %2492 }
0x1270   :  { %v1717_v50 = vmul.f32 %v2493_v48, %v1701_v31 }
0x1272   :  { %v2935_v2 = vmul.f32 %v2073_v0, %v1717_v50 }
0x1274   :  { %v1724_v5 = vpack.c.bf16 %v2935_v2, %v2933_v1 }
0x1276   :  { %2329 = vmatmul.mubr.msk.bf16.vlgmr.msra.gmra.mrb[44].mxu1 %vm159_vm4, %v1724_v5 }
0x1277   :  { %2348 = vmatprep.mubr.msk.f32.mxu1 %vm2512_vm3, %v2511_v9 }
0x1349   :  { %v1774_v11 = vpop.f32.mrb[44].mxu1 }
0x134a   :  { %v1783_v12 = vmul.f32 0.70710677, %v1774_v11  ;;  %v2330_v13 = vpop.f32.mrb[45].mxu1  ;;  %v1781_v60 = vmul.f32 0.5, %v1774_v11 }
0x134b   :  { %v1777_v14 = vpop.f32.mrb[46].mxu1 }
0x134c   :  { %v1789_v29 = vand.u32 2147483647, %v1783_v12  ;;  %v1784_v15 = vmul.f32 0.70710677, %v1777_v14  ;;  %v2331_v27 = vpop.f32.mrb[47].mxu1  ;;  %vm1785_vm12 = vcmp.ge.f32.partialorder %v1783_v12, 0.0 }
0x134d   :  { %v1787_v4 = vsel %vm1785_vm12, 1.0, %v2527_v17  ;;  %v1782_v61 = vmul.f32 0.5, %v1777_v14 }
0x134e   :  { %v1791_v16 = vmul.f32 0.3275911, %v1789_v29  ;;  %v1790_v18 = vand.u32 2147483647, %v1784_v15  ;;  %v1815_v9 = vsub.f32 0.0, %v1789_v29  ;;  %vm1786_vm13 = vcmp.ge.f32.partialorder %v1784_v15, 0.0 }
0x134f   :  { %v1788_v57 = vsel %vm1786_vm13, 1.0, %v2527_v17 }
0x1350   :  { %v1793_v19 = vadd.f32 1.0, %v1791_v16  ;;  %v1792_v20 = vmul.f32 0.3275911, %v1790_v18  ;;  %v1816_v22 = vsub.f32 0.0, %v1790_v18  ;;  %v1817_v24 = vmul.f32 %v1815_v9, %v1789_v29 }
0x1352   :  { %2494 = vrcp.f32 %v1793_v19  ;;  %v1794_v21 = vadd.f32 1.0, %v1792_v20  ;;  %v1818_v30 = vmul.f32 %v1816_v22, %v1790_v18  ;;  %v1819_v33 = vmul.f32 1.442695, %v1817_v24 }
0x1353   :  { %v2528_v19 = vmov 0.0|0.0  }
0x1354   :  { %2496 = vrcp.f32 %v1794_v21  ;;  %v1821_v40 = vmul.f32 1.442695, %v1818_v30  ;;  %2367 = vmatprep.subr.bf16.mxu1 %v2528_v19 }
0x1355   :  { %2498 = vpow2.f32 %v1819_v33 }
0x1356   :  { %2500 = vpow2.f32 %v1821_v40 }
0x135c   :  { %v2495_v23 = vpop.eup %2494 }
0x135d   :  { %v1797_v25 = vmul.f32 1.0614054, %v2495_v23 }
0x135e   :  { %v2497_v26 = vpop.eup %2496 }
0x135f   :  { %v1799_v28 = vadd.f32 -1.4531521, %v1797_v25  ;;  %v1798_v35 = vmul.f32 1.0614054, %v2497_v26  ;;  %v2499_v52 = vpop.eup %2498 }
0x1360   :  { %v2501_v3 = vpop.eup %2500 }
0x1361   :  { %v1801_v36 = vmul.f32 %v2495_v23, %v1799_v28  ;;  %v1800_v37 = vadd.f32 -1.4531521, %v1798_v35 }
0x1363   :  { %v1803_v38 = vadd.f32 1.4214138, %v1801_v36  ;;  %v1802_v41 = vmul.f32 %v2497_v26, %v1800_v37  ;;  %v1937_v36 = vld [vmem:[%s2983_s1 + $0x50] sm:$0xff]  ;;  %v1938_v37 = vld [vmem:[%s2983_s1 + $0x58] sm:$0xff] }
0x1365   :  { %v1805_v43 = vmul.f32 %v2495_v23, %v1803_v38  ;;  %v1804_v39 = vadd.f32 1.4214138, %v1802_v41 }
0x1367   :  { %v1807_v42 = vadd.f32 -0.28449672, %v1805_v43  ;;  %v1806_v44 = vmul.f32 %v2497_v26, %v1804_v39  ;;  %v1941_v39 = vld [vmem:[%s2983_s1 + $0x90] sm:$0x3] }
0x1369   :  { %v1809_v45 = vmul.f32 %v2495_v23, %v1807_v42  ;;  %v1808_v46 = vadd.f32 -0.28449672, %v1806_v44 }
0x136b   :  { %v1811_v47 = vadd.f32 0.2548296, %v1809_v45  ;;  %v1810_v49 = vmul.f32 %v2497_v26, %v1808_v46 }
0x136d   :  { %v1813_v51 = vmul.f32 %v2495_v23, %v1811_v47  ;;  %v1812_v10 = vadd.f32 0.2548296, %v1810_v49 }
0x136f   :  { %v1823_v31 = vmul.f32 %v2499_v52, %v1813_v51  ;;  %v1814_v53 = vmul.f32 %v2497_v26, %v1812_v10  ;;  %v2082_v26 = vld [vmem:[%s2983_s1 + $0x88] ss:$0 sm:$0xff] }
0x1371   :  { %v1825_v32 = vsub.f32 1.0, %v1823_v31  ;;  %v1824_v54 = vmul.f32 %v2501_v3, %v1814_v53 }
0x1373   :  { %v1827_v55 = vmul.f32 %v1825_v32, %v1787_v4  ;;  %v1826_v56 = vsub.f32 1.0, %v1824_v54 }
0x1375   :  { %v1829_v58 = vadd.f32 1.0, %v1827_v55  ;;  %v1828_v59 = vmul.f32 %v1826_v56, %v1788_v57 }
0x1377   :  { %v1830_v62 = vadd.f32 1.0, %v1828_v59  ;;  %v1831_v63 = vmul.f32 %v1829_v58, %v1781_v60 }
0x1379   :  { %v1832_v48 = vmul.f32 %v1830_v62, %v1782_v61 }
0x137b   :  { %v1833_v0 = vpack.c.bf16 %v1832_v48, %v1831_v63 }
0x137d   :  { %2341 = vmatmul.mubr.msk.bf16.vlgmr.msra.gmra.mrb[48].mxu0 %vm42_vm0, %v1833_v0 }
0x1450   :  { %v1895_v50 = vpop.f32.mrb[48].mxu0 }
0x1451   :  { %v1902_v5 = vadd.f32 %v1895_v50, %v2933_v1  ;;  %v2342_v6 = vpop.f32.mrb[49].mxu0 }
0x1452   :  { %v1898_v7 = vpop.f32.mrb[50].mxu0 }
0x1453   :  { %v1903_v8 = vadd.f32 %v1898_v7, %v2935_v2  ;;  %v2343_v34 = vpop.f32.mrb[51].mxu0  ;;  %v1905_v17 = vsel %vm159_vm4, %v1902_v5, 0.0 }
0x1454   :  { %1906 = vadd.xlane.f32.xlu1 %v1905_v17 }
0x1455   :  { %v1908_v11 = vsel %vm159_vm4, %v1903_v8, 0.0 }
0x1456   :  { %1909 = vadd.xlane.f32.xlu0 %v1908_v11 }
0x14e1   :  { %v1907_v12 = vpop.xlane.xlu1 %1906 }
0x14e2   :  { %v1911_v13 = vmul.f32 0.03125, %v1907_v12 }
0x14e3   :  { %v1910_v14 = vpop.xlane.xlu0 %1909 }
0x14e4   :  { %v1913_v29 = vsub.f32 %v1902_v5, %v1911_v13  ;;  %v1912_v15 = vmul.f32 0.03125, %v1910_v14 }
0x14e6   :  { %v1914_v27 = vsub.f32 %v1903_v8, %v1912_v15  ;;  %v1915_v16 = vmul.f32 %v1913_v29, %v1913_v29 }
0x14e8   :  { %v1917_v1 = vsel %vm159_vm4, %v1915_v16, 0.0  ;;  %v1916_v18 = vmul.f32 %v1914_v27, %v1914_v27 }
0x14e9   :  { %1918 = vadd.xlane.f32.xlu1 %v1917_v1 }
0x14ea   :  { %v1920_v2 = vsel %vm159_vm4, %v1916_v18, 0.0 }
0x14eb   :  { %1921 = vadd.xlane.f32.xlu0 %v1920_v2 }
0x1576   :  { %v1919_v20 = vpop.xlane.xlu1 %1918 }
0x1577   :  { %v1923_v21 = vmul.f32 0.03125, %v1919_v20 }
0x1578   :  { %v1922_v9 = vpop.xlane.xlu0 %1921 }
0x1579   :  { %v1925_v22 = vadd.f32 1e-05, %v1923_v21  ;;  %v1924_v23 = vmul.f32 0.03125, %v1922_v9 }
0x157b   :  { %2502 = vrsqrt.f32 %v1925_v22  ;;  %v1926_v24 = vadd.f32 1e-05, %v1924_v23 }
0x157d   :  { %2504 = vrsqrt.f32 %v1926_v24 }
0x1585   :  { %v2503_v25 = vpop.eup %2502 }
0x1586   :  { %v1929_v28 = vmul.f32 %v2503_v25, %v1913_v29 }
0x1587   :  { %v2505_v30 = vpop.eup %2504 }
0x1588   :  { %v1930_v33 = vmul.f32 %v2505_v30, %v1914_v27  ;;  %v1935_v35 = vmul.f32 %v2082_v26, %v1929_v28 }
0x158a   :  { %v1936_v38 = vmul.f32 %v2082_v26, %v1930_v33  ;;  %v1939_v40 = vmul.f32 %v1937_v36, %v1935_v35 }
0x158c   :  { %v1940_v41 = vmul.f32 %v1938_v37, %v1936_v38 }
0x158e   :  { %v2368_v43 = vpack.c.bf16 %v1940_v41, %v1939_v40 }
0x1590   :  { %2369 = vmatpush3.bf16.msra.mxu1 %v2368_v43 }
0x1593   :  { %2349 = vmatmul.mubr.msk.f32.vlgmr.msra.gmra.mrb[48].mxu1 %vm257_vm6, %v1941_v39 }
0x1666   :  { %v2011_v42 = vpop.f32.mrb[48].mxu1 }
0x1667   :  { %v2350_v44 = vpop.f32.mrb[49].mxu1  ;;  %v2016_v45 = vsel %vm2015_vm14, %v2011_v42, 0.0 }
0x1668   :  { %2017 = vadd.xlane.f32.xlu1 %v2016_v45 }
0x16f5   :  { %v2018_v46 = vpop.xlane.xlu1 %2017 }
0x16f6   :  { %v2019_v47 = vsub.f32 0.0, %v2018_v46 }
0x16f8   :  { %v2020_v49 = vmul.f32 1.442695, %v2019_v47 }
0x16fa   :  { %2506 = vpow2.f32 %v2020_v49 }
0x1704   :  { %v2507_v51 = vpop.eup %2506 }
0x1705   :  { %v2022_v52 = vadd.f32 1.0, %v2507_v51 }
0x1707   :  { %2508 = vrcp.f32 %v2022_v52 }
0x1711   :  { %v2509_v10 = vpop.eup %2508 }
0x1712   :  { %2026 = vst.msk [vmem:[%s2985_s3] sm:$0x3] %vm2025_vm15, %v2509_v10 }

</bundles_post_ra>
